<compile_context>
chip_gen: v5e
topology: v5e:2x2
jax: 0.10.0
libtpu: 0.0.40
codegen_flags: <defaults>
</compile_context>

<pallas_src>
import functools
import math

import numpy as np
import jax
import jax.numpy as jnp
from jax.experimental import pallas as pl
from jax.experimental.pallas import tpu as pltpu

_LN_10000 = math.log(10000.0)
_TINY_ELEMS = 8 * 128  # less than one f32 vreg-tile of work -> plain XLA add wins


def build_pe(d_model: int = 2, max_len: int = 6) -> jnp.ndarray:
    """Reference sinusoidal PE buffer (matches the PyTorch module's buffer)."""
    position = jnp.arange(0, max_len, dtype=jnp.float32)[:, None]        # [max_len, 1]
    embedding_index = jnp.arange(0, d_model, 2, dtype=jnp.float32)       # [ceil(d/2)]
    div_term = 1.0 / jnp.power(jnp.float32(10000.0), embedding_index / d_model)
    pe = jnp.zeros((max_len, d_model), dtype=jnp.float32)
    pe = pe.at[:, 0::2].set(jnp.sin(position * div_term))
    # slice handles odd d_model (the original torch code would shape-error there)
    pe = pe.at[:, 1::2].set(jnp.cos(position * div_term[: d_model // 2]))
    return pe


def _pos_enc_kernel(x_ref, o_ref, *, d_model: int):
    """out = x + pe(rows of this block), pe generated in-kernel (no HBM stream)."""
    rows, cols = x_ref.shape                      # (row_tile, d_model)
    row0 = pl.program_id(0) * rows                # global row offset of this block

    pos = (row0 + jax.lax.broadcasted_iota(jnp.int32, (rows, cols), 0)).astype(jnp.float32)
    col = jax.lax.broadcasted_iota(jnp.int32, (rows, cols), 1)
    odd = col & 1                                 # 0 for sin columns, 1 for cos columns
    pair = (col - odd).astype(jnp.float32)        # 2 * (col // 2) == embedding_index

    # inv_freq = 10000 ** (-pair / d_model), via EUP exp (free VLIW slot).
    inv_freq = jnp.exp(pair * jnp.float32(-_LN_10000 / float(d_model)))
    angle = pos * inv_freq
    pe = jnp.where(odd == 0, jnp.sin(angle), jnp.cos(angle))

    o_ref[...] = (x_ref[...].astype(jnp.float32) + pe).astype(o_ref.dtype)


def _default_row_tile(seq_len: int, d_model: int, itemsize: int) -> int:
    # ~2 MiB per block; one input + one output stream, double-buffered => <~8 MiB
    # VMEM, comfortably under the 32 MiB scoped default on v5e/v6e/v7x.
    budget_rows = max(8, (2 << 20) // max(1, d_model * itemsize))
    tile = min(seq_len, 1024, budget_rows)
    if tile < seq_len:
        tile = max(8, (tile // 8) * 8)  # keep sublane-aligned blocks when tiling
    return tile


def position_encoding_forward(pos_embedding: jnp.ndarray,
                              *,
                              max_len: int | None = None,
                              row_tile: int | None = None) -> jnp.ndarray:
    """Pallas implementation of PositionEncoding.forward (2-D [seq, d_model] input)."""
    seq_len, d_model = pos_embedding.shape
    if max_len is not None and seq_len > max_len:
        raise ValueError(f"seq_len={seq_len} exceeds max_len={max_len}")

    # Tiny inputs: a pallas_call is pure launch overhead here; fused XLA add is faster.
    if seq_len * d_model < _TINY_ELEMS:
        pe = build_pe(d_model, seq_len)
        return pos_embedding + pe.astype(pos_embedding.dtype)

    if row_tile is None:
        row_tile = _default_row_tile(seq_len, d_model, pos_embedding.dtype.itemsize)

    grid = (pl.cdiv(seq_len, row_tile),)
    kernel = functools.partial(_pos_enc_kernel, d_model=d_model)

    return pl.pallas_call(
        kernel,
        out_shape=jax.ShapeDtypeStruct((seq_len, d_model), pos_embedding.dtype),
        grid=grid,
        in_specs=[pl.BlockSpec((row_tile, d_model), lambda i: (i, 0))],
        out_specs=pl.BlockSpec((row_tile, d_model), lambda i: (i, 0)),
        compiler_params=pltpu.CompilerParams(dimension_semantics=("parallel",)),
    )(pos_embedding)


if __name__ == "__main__":
    # --- Pallas path: lane-dense (d_model multiple of 128), multi-block grid ---
    d_model, max_len = 128, 256
    seq_len = 256
    key = jax.random.PRNGKey(0)
    pos_embedding = jax.random.normal(key, (seq_len, d_model), dtype=jnp.float32)

    # row_tile=64 forces grid=(4,) so the per-block row-offset logic is exercised;
    # production calls can omit it and get the larger default tiles.
    out = position_encoding_forward(pos_embedding, max_len=max_len, row_tile=64)
    out = jax.block_until_ready(out)

    ref = pos_embedding + build_pe(d_model, max_len)[:seq_len, :]
    assert out.shape == ref.shape and out.dtype == ref.dtype
    np.testing.assert_allclose(np.asarray(out), np.asarray(ref), rtol=1e-3, atol=1e-3)

    # --- Default module config (d_model=2, max_len=6): tiny -> XLA fallback path ---
    x_tiny = jax.random.normal(jax.random.PRNGKey(0), (6, 2), dtype=jnp.float32)
    out_tiny = jax.block_until_ready(position_encoding_forward(x_tiny, max_len=6))
    ref_tiny = x_tiny + build_pe(2, 6)[:6, :]
    np.testing.assert_allclose(np.asarray(out_tiny), np.asarray(ref_tiny),
                               rtol=1e-6, atol=1e-6)

    print("KERNEL_OK")
</pallas_src>

<mosaic_0001>
module attributes {stable_mosaic.version = 11 : i64} {
  func.func @_pos_enc_kernel(%arg0: i32, %arg1: memref<64x128xf32, #tpu.memory_space<vmem>>, %arg2: memref<64x128xf32, #tpu.memory_space<vmem>>) attributes {dimension_semantics = [#tpu.dimension_semantics<parallel>], iteration_bounds = array<i64: 4>, scalar_prefetch = 0 : i64, scratch_operands = 0 : i64, tpu.core_type = #tpu.core_type<tc>, window_params = [{transform_indices = @transform_0, window_bounds = array<i64: 64, 128>}, {transform_indices = @transform_1, window_bounds = array<i64: 64, 128>}]} {
    %c64_i32 = arith.constant 64 : i32
    %0 = arith.muli %arg0, %c64_i32 : i32
    %1 = tpu.iota {dimensions = array<i32: 0>} : vector<64x128xi32>
    %2 = vector.broadcast %0 : i32 to vector<64x128xi32>
    %3 = arith.addi %2, %1 : vector<64x128xi32>
    %4 = arith.sitofp %3 : vector<64x128xi32> to vector<64x128xf32>
    %5 = tpu.iota {dimensions = array<i32: 1>} : vector<64x128xi32>
    %c1_i32 = arith.constant 1 : i32
    %6 = vector.broadcast %c1_i32 : i32 to vector<64x128xi32>
    %7 = arith.andi %5, %6 : vector<64x128xi32>
    %8 = arith.subi %5, %7 : vector<64x128xi32>
    %9 = arith.sitofp %8 : vector<64x128xi32> to vector<64x128xf32>
    %cst = arith.constant -0.0719557852 : f32
    %10 = vector.broadcast %cst : f32 to vector<64x128xf32>
    %11 = arith.mulf %9, %10 : vector<64x128xf32>
    %12 = math.exp %11 : vector<64x128xf32>
    %13 = arith.mulf %4, %12 : vector<64x128xf32>
    %c0_i32 = arith.constant 0 : i32
    %14 = vector.broadcast %c0_i32 : i32 to vector<64x128xi32>
    %15 = arith.cmpi eq, %7, %14 : vector<64x128xi32>
    %16 = math.sin %13 : vector<64x128xf32>
    %17 = math.cos %13 : vector<64x128xf32>
    %18 = arith.select %15, %16, %17 : vector<64x128xi1>, vector<64x128xf32>
    %c0 = arith.constant 0 : index
    %c0_0 = arith.constant 0 : index
    %19 = vector.load %arg1[%c0, %c0_0] : memref<64x128xf32, #tpu.memory_space<vmem>>, vector<64x128xf32>
    %20 = arith.addf %19, %18 : vector<64x128xf32>
    %c0_1 = arith.constant 0 : index
    %c0_2 = arith.constant 0 : index
    %21 = vector.load %arg2[%c0_1, %c0_2] : memref<64x128xf32, #tpu.memory_space<vmem>>, vector<64x128xf32>
    tpu.vector_store %arg2[%c0_1, %c0_2], %20 {strides = array<i32>} : memref<64x128xf32, #tpu.memory_space<vmem>>, vector<64x128xf32>,
    return
  }
  func.func @transform_0(%arg0: i32) -> (i32, i32) {
    %c0_i32 = arith.constant 0 : i32
    %c0_i32_0 = arith.constant 0 : i32
    return %arg0, %c0_i32 : i32, i32
  }
  func.func @transform_1(%arg0: i32) -> (i32, i32) {
    %c0_i32 = arith.constant 0 : i32
    %c0_i32_0 = arith.constant 0 : i32
    return %arg0, %c0_i32 : i32, i32
  }
}

</mosaic_0001>

<bundles_post_ra>
// kernel: tpu_custom_call.1
= control target key start
LH: loop header
LB: loop body
LE: loop exit
PB: predicated region body
PF: predicated region fallthrough
CT: control target
= control target key end

     0   :  { %6 = vsyncpa [#allocation3], 0  ;;  %s4539_s0 = inlined_call_operand.hbm [shape: f32[256,128], index: 0, kind: input, shape index: {}]   ;;  %s4540_s1 = inlined_call_operand.hbm [shape: f32[256,128], index: 1, kind: output, shape index: {}]  }
   0x1   :  { %8 = vsyncpa [#allocation3 + $0x1], 0 }
   0x2   :  { %9 = vsyncpa [#allocation4], 0 }
   0x3   :  { %11 = vsyncpa [#allocation4 + $0x1], 0  ;;  %s3019_s6 = smov 0   ;;  %s3021_s7 = smov 0  }
   0x4   :  { %s3023_s8 = smov 0   ;;  %s3025_s9 = smov 0  }
   0x5 LB: > { %s3040_s10 = sadd.s32 4294967295, %s2996_s9   ;;  %s2776_s11 = sadd.s32 4294967294, %s2996_s9   ;;  %s2996_s9 = sphi %s3025_s9, %s4661_s9   ;;  %s2992_s8 = sphi %s3023_s8, %s4660_s8   ;;  %s2988_s7 = sphi %s3021_s7, %s4659_s7   ;;  %s2984_s6 = sphi %s3019_s6, %s4658_s6  }
   0x6   : > { %s3044_s12 = sadd.s32 1, %s2996_s9   ;;  %s24_s13 = sadd.s32 1, %s2992_s8 }
   0x7   : > { %s21_s14 = ssub.s32 %s2996_s9, %s3044_s12  ;;  %p31_p0 = scmp.ne.s32.totalorder %s2992_s8, %s2988_s7 }
   0x8   : > { %p22_p1 = scmp.eq.s32.totalorder %s21_s14, 0  ;;  %p32_p2 = scmp.eq.s32.totalorder %s2996_s9, 0 }
   0x9   : > { %p37_p3 = scmp.ne.s32.totalorder %s2988_s7, %s2984_s6  ;;  %p38_p4 = scmp.eq.s32.totalorder %s3040_s10, 0 }
   0xa   : > { %s3056_s15 = scalar_select %p22_p1, %s2992_s8, %s24_s13  }
   0xb   : > { %p3058_p5 = por %p32_p2, %p31_p0  ;;  %p3062_p6 = por %p38_p4, %p37_p3 }
   0xc   : > { %p61_p7 = scmp.eq.s32.totalorder %s3040_s10, 3  ;;  %p67_p8 = scmp.eq.s32.totalorder %s2776_s11, 3 }
   0xd   : > { %p2853_p9 = scmp.lt.s32.totalorder %s2996_s9, 4  ;;  %s87_s20 = sand.u32 1, %s2992_s8  }
   0xe   : > { %p3068_p10 = por %p61_p7, %p31_p0  ;;  %p3072_p11 = por %p67_p8, %p37_p3 }
   0xf   : > { %s2839_s21 = sshll.u32 %s2996_s9, 6  ;;  %s2779_s22 = sshll.u32 %s87_s20, 6 }
  0x10   : > { %s96_s25 = scalar_lea.hbm %s4539_s0, %s2839_s21  ;;  %s91_s27 = scalar_lea.vmem [#allocation2], %s2779_s22 }
  0x11   : > { %s97_s26 = sshll.u32 %s96_s25, 4  ;;  %s99_s28 = sshll.u32 %s91_s27, 4  ;;  %s98_s26 = int_to_ptr.hbm [resolvable:$true] %s97_s26  ;;  %s100_s28 = int_to_ptr.vmem [resolvable:$true] %s99_s28 }
  0x12   : > { %p3083_p12 = pnand %p2853_p9, %p3058_p5  ;;  %p2782_p13 = scmp.ge.s32.totalorder %s2996_s9, 1 }
  0x13   : > { %p107_p0 = scmp.lt.s32.totalorder %s2996_s9, 5  ;;  %s88_s30 = scalar_lea.sflag [#allocation3], %s87_s20 }
  0x14   : > { %s2900_s2 = sshra.s32 %s98_s26, 4  ;;  %p2904_p2 = pneg %p3083_p12  ;;  %s2901_s2 = int_to_ptr.hbm [resolvable:$true] %s2900_s2 }
  0x15   : > { %s2902_s3 = scalar_lea.hbm %s2901_s2, 64  ;;  %s2907_s11 = scalar_lea.hbm %s4539_s0, 256 }
  0x16   : > { %p2903_p1 = scmp.ne.s32.totalorder %s2901_s2, %s2902_s3  ;;  %p2908_p5 = scmp.lt.s32.totalorder %s2901_s2, %s4539_s0 }
  0x17   : > { %p2909_p7 = scmp.lt.s32.totalorder %s2907_s11, %s2902_s3 }
  0x18   : > { %p2905_p3 = pnand %p2904_p2, %p2903_p1 }
  0x19   : > { %p2910_p8 = por %p2909_p7, %p2908_p5 }
  0x1a   : > { %p2906_p4 = pneg %p2905_p3 }
  0x1c   : > { %p2911_p9 = pnand %p2910_p8, %p2906_p4 }
  0x1e   : > { %2914 = shalt.err (!%p2911_p9)
}
  0x1f   : > { %s2998_s16 = smov 128   ;;  %s2999_s20 = smov 8  }
  0x20   : > { %2848 = dma.hbm_to_vmem [thread:$0]  (!%p3083_p12), %s98_s26, 1024, %s100_s28, %s88_s30, %s2998_s16, %s2998_s16, %s2999_s20  }
  0x21   : > { %p108_p1 = pnand %p2782_p13, %p107_p0 }
  0x23   : > { %111 = sbr.rel (%p108_p1) target bundleno = 411 (0x19b), region = 24 }
  0x28   : > { %s3104_s21 = sand.u32 1, %s2988_s7  }
  0x29   : > { %s2783_s22 = sshll.u32 %s3104_s21, 6  ;;  %s114_s23 = scalar_lea.sflag [#allocation3], %s3104_s21 }
  0x2a   : > { %s3110_s24 = scalar_lea.vmem [#allocation2], %s2783_s22 }
  0x2b   : > { %2975 = dma.done.wait (%p3062_p6), %s114_s23, 1024  }
  0x2c   : > { %2977 = vsyncadd (%p3062_p6), %s114_s23, 4294966272  ;;  %v140_v0 = vlaneseq  ;;  %s2785_s25 = sshll.u32 %s3040_s10, 6  ;;  %v4566_v38 = vmov 683565275   ;;  %v4552_v40 = vmov 2475754826  }
  0x2d   : > { %v3128_v7 = vstv %s2785_s25  ;;  %v4548_v42 = vmov 2131351028   ;;  %v4550_v44 = vmov 2102212464   ;;  %v4546_v46 = vmov 920167782   ;;  %s2699_s28 = scalar_lea.hbm %s4540_s1, %s2785_s25 }
  0x2e   : > { %v3116_v1 = vand.u32 127, %v140_v0  ;;  %v3119_v3 = vshrl.u32 %v140_v0, 7  ;;  %v4544_v55 = vmov 1326507024   ;;  %s4490_s17 = scalar_lea.vmem [#allocation5], %s2783_s22  ;;  %s2702_s30 = sshll.u32 %s2699_s28, 4  ;;  %s2703_s30 = int_to_ptr.hbm [resolvable:$true] %s2702_s30 }
  0x2f   : > { %s2700_s29 = sshll.u32 %s4490_s17, 4  ;;  %s2688_s10 = scalar_lea.sflag [#allocation4], %s3104_s21  ;;  %s2701_s29 = int_to_ptr.vmem [resolvable:$true] %s2700_s29 }
  0x30   : > { %4591 = vst [vmem:[#allocation8_spill] sm:$0xff] %v3116_v1  ;;  %v4541_v2 = vand.u32 1, %v3116_v1  ;;  %v142_v6 = vadd.s32 8, %v3119_v3  ;;  %v150_v10 = vadd.s32 %v3128_v7, %v3119_v3  ;;  %v143_v15 = vadd.s32 16, %v3119_v3  ;;  %s2944_s2 = sshra.s32 %s2703_s30, 4  ;;  %s2950_s11 = scalar_lea.hbm %s4540_s1, 256  ;;  %s2945_s2 = int_to_ptr.hbm [resolvable:$true] %s2944_s2 }
  0x31   : > { %s2946_s3 = scalar_lea.hbm %s2945_s2, 64  ;;  %p2951_p0 = scmp.lt.s32.totalorder %s2945_s2, %s4540_s1 }
  0x32   : > { %v169_v4 = vsub.s32 %v3116_v1, %v4541_v2  ;;  %v151_v11 = vadd.s32 %v3128_v7, %v142_v6  ;;  %v158_v12 = vcvt.s32.f32 %v150_v10  ;;  %v152_v19 = vadd.s32 %v3128_v7, %v143_v15  ;;  %p2947_p6 = scmp.ne.s32.totalorder %s2945_s2, %s2946_s3  ;;  %p2952_p2 = scmp.lt.s32.totalorder %s2950_s11, %s2946_s3 }
  0x34   : > { %v170_v5 = vcvt.s32.f32 %v169_v4  ;;  %v159_v13 = vcvt.s32.f32 %v151_v11  ;;  %v160_v25 = vcvt.s32.f32 %v152_v19  ;;  %p2948_p12 = pnand %p2947_p6, %p3068_p10  ;;  %p2953_p3 = por %p2952_p2, %p2951_p0 }
  0x36   : > { %v171_v8 = vmul.f32 -0.071955785, %v170_v5  ;;  %p2949_p13 = pneg %p2948_p12 }
  0x38   : > { %v172_v9 = vmul.f32 1.442695, %v171_v8  ;;  %p2954_p4 = pnand %p2953_p3, %p2949_p13 }
  0x3a   : > { %2898 = vpow2.f32 %v172_v9 }
  0x40   : > { %v3133_v14 = vpop.eup %2898 }
  0x41   : > { %v3137_v16 = vmul.f32 %v3133_v14, %v158_v12  ;;  %v3140_v17 = vmul.f32 %v3133_v14, %v159_v13  ;;  %v3149_v30 = vmul.f32 %v3133_v14, %v160_v25 }
  0x43   : > { %v186_v18 = vand.u32 2139095040, %v3137_v16  ;;  %v341_v20 = vand.u32 2139095040, %v3140_v17  ;;  %v183_v21 = vand.u32 2147483647, %v3137_v16  ;;  %v338_v32 = vand.u32 2147483647, %v3140_v17 }
  0x44   : > { %v496_v49 = vand.u32 2139095040, %v3149_v30 }
  0x45   : > { %v187_v22 = vshrl.u32 %v186_v18, 23  ;;  %v342_v23 = vshrl.u32 %v341_v20, 23  ;;  %v190_v27 = vand.u32 8388607, %v183_v21  ;;  %v345_v48 = vand.u32 8388607, %v338_v32 }
  0x46   : > { %v497_v63 = vshrl.u32 %v496_v49, 23 }
  0x47   : > { %v2786_v24 = vadd.s32 4294967169, %v187_v22  ;;  %v2789_v26 = vadd.s32 4294967169, %v342_v23  ;;  %v191_v33 = vor.u32 8388608, %v190_v27  ;;  %v346_v9 = vor.u32 8388608, %v345_v48 }
  0x48   : > { %v2792_v19 = vadd.s32 4294967169, %v497_v63  ;;  %v4555_v63 = vmov 0  }
  0x49   : > { %v193_v28 = vadd.s32 1, %v2786_v24  ;;  %v348_v29 = vadd.s32 1, %v2789_v26  ;;  %v3170_v53 = vshll.u32 %v191_v33, 8 }
  0x4b   : > { %vm194_vm0 = vcmp.gt.s32.totalorder %v193_v28, 0  ;;  %vm349_vm1 = vcmp.gt.s32.totalorder %v348_v29, 0  ;;  %v232_v8 = vand.u32 65535, %v3170_v53  ;;  %v233_v12 = vshrl.u32 %v3170_v53, 16 }
  0x4c   : > { %v195_v31 = vsel %vm194_vm0, %v193_v28, 0  ;;  %v350_v36 = vsel %vm349_vm1, %v348_v29, 0  ;;  %v3215_v28 = vshll.u32 %v346_v9, 8 }
  0x4d   : > { %v197_v34 = vand.u32 31, %v195_v31  ;;  %v3152_v35 = vshrl.u32 %v195_v31, 5  ;;  %v352_v57 = vand.u32 31, %v350_v36  ;;  %v3211_v25 = vshrl.u32 %v350_v36, 5 }
  0x4f   : > { %v3154_v37 = vsub.s32 32, %v197_v34  ;;  %v200_v39 = vshll.u32 %v4566_v38, %v197_v34  ;;  %v203_v41 = vshll.u32 %v4552_v40, %v197_v34  ;;  %v206_v43 = vshll.u32 %v4548_v42, %v197_v34 }
  0x50   : > { %v209_v45 = vshll.u32 %v4550_v44, %v197_v34  ;;  %v212_v47 = vshll.u32 %v4546_v46, %v197_v34  ;;  %vm215_vm2 = vcmp.lt.s32.totalorder %v3152_v35, 1  ;;  %vm218_vm3 = vcmp.lt.s32.totalorder %v3152_v35, 4 }
  0x51   : > { %v201_v50 = vshrl.u32 %v4552_v40, %v3154_v37  ;;  %v204_v51 = vshrl.u32 %v4548_v42, %v3154_v37  ;;  %v207_v52 = vshrl.u32 %v4550_v44, %v3154_v37  ;;  %v210_v54 = vshrl.u32 %v4546_v46, %v3154_v37 }
  0x52   : > { %v213_v56 = vshrl.u32 %v4544_v55, %v3154_v37  ;;  %vm217_vm4 = vcmp.lt.s32.totalorder %v3152_v35, 3  ;;  %vm216_vm5 = vcmp.lt.s32.totalorder %v3152_v35, 2  ;;  %v3205_v13 = vsub.s32 32, %v352_v57 }
  0x53   : > { %v3177_v58 = vor.u32 %v201_v50, %v200_v39  ;;  %v3179_v59 = vor.u32 %v204_v51, %v203_v41  ;;  %v3181_v60 = vor.u32 %v207_v52, %v206_v43  ;;  %v211_v61 = vor.u32 %v210_v54, %v209_v45 }
  0x54   : > { %v214_v62 = vor.u32 %v213_v56, %v212_v47  ;;  %v355_v26 = vshll.u32 %v4566_v38, %v352_v57  ;;  %v358_v27 = vshll.u32 %v4552_v40, %v352_v57  ;;  %v356_v34 = vshrl.u32 %v4552_v40, %v3205_v13 }
  0x55   : > { %v223_v0 = vsel %vm215_vm2, %v3177_v58, %v3179_v59  ;;  %v227_v4 = vsel %vm215_vm2, %v3179_v59, %v3181_v60  ;;  %v224_v5 = vsel %vm218_vm3, %v211_v61, 920167782  ;;  %v359_v36 = vshrl.u32 %v4548_v42, %v3205_v13 }
  0x56   : > { %v228_v6 = vsel %vm218_vm3, %v214_v62, 1326507024  ;;  %v225_v10 = vsel %vm217_vm4, %v3181_v60, %v224_v5  ;;  %v361_v48 = vshll.u32 %v4548_v42, %v352_v57  ;;  %v362_v49 = vshrl.u32 %v4550_v44, %v3205_v13 }
  0x57   : > { %v229_v11 = vsel %vm217_vm4, %v211_v61, %v228_v6  ;;  %v226_v15 = vsel %vm216_vm5, %v223_v0, %v225_v10  ;;  %v3230_v61 = vor.u32 %v356_v34, %v355_v26  ;;  %v364_v62 = vshll.u32 %v4550_v44, %v352_v57 }
  0x58   : > { %v230_v18 = vsel %vm216_vm5, %v227_v4, %v229_v11  ;;  %v256_v23 = vand.u32 65535, %v226_v15  ;;  %v257_v24 = vshrl.u32 %v226_v15, 16  ;;  %v365_v5 = vshrl.u32 %v4546_v46, %v3205_v13 }
  0x59   : > { %v234_v20 = vand.u32 65535, %v230_v18  ;;  %v235_v22 = vshrl.u32 %v230_v18, 16  ;;  %v367_v9 = vshll.u32 %v4546_v46, %v352_v57  ;;  %vm370_vm10 = vcmp.lt.s32.totalorder %v3211_v25, 1 }
  0x5a   : > { %v258_v39 = vmul.u32 %v256_v23, %v232_v8  ;;  %v259_v41 = vmul.u32 %v257_v24, %v232_v8  ;;  %v3221_v43 = vmul.u32 %v256_v23, %v233_v12  ;;  %v261_v51 = vmul.u32 %v257_v24, %v233_v12 }
  0x5b   : > { %v236_v29 = vmul.u32 %v234_v20, %v232_v8  ;;  %v237_v31 = vmul.u32 %v235_v22, %v232_v8  ;;  %v3217_v33 = vmul.u32 %v234_v20, %v233_v12  ;;  %v239_v50 = vmul.u32 %v235_v22, %v233_v12 }
  0x5c   : > { %v262_v52 = vshll.u32 %v259_v41, 16  ;;  %v264_v54 = vshll.u32 %v3221_v43, 16  ;;  %v3237_v8 = vor.u32 %v359_v36, %v358_v27  ;;  %v3240_v12 = vor.u32 %v362_v49, %v361_v48 }
  0x5d   : > { %v240_v45 = vshll.u32 %v237_v31, 16  ;;  %v242_v47 = vshll.u32 %v3217_v33, 16  ;;  %v366_v20 = vor.u32 %v365_v5, %v364_v62  ;;  %v368_v22 = vshrl.u32 %v4544_v55, %v3205_v13 }
  0x5e   : > { %vm266_vm7 = vc.u32 %v258_v39, %v262_v52  ;;  %v268_v4 = vadd.s32 %v262_v52, %v258_v39  ;;  %v263_v23 = vshrl.u32 %v259_v41, 16  ;;  %vm372_vm11 = vcmp.lt.s32.totalorder %v3211_v25, 3 }
  0x5f   : > { %vm244_vm6 = vc.u32 %v236_v29, %v240_v45  ;;  %v246_v56 = vadd.s32 %v240_v45, %v236_v29  ;;  %v267_v6 = vsel %vm266_vm7, 1, %v4555_v63  ;;  %v503_v24 = vadd.s32 1, %v2792_v19 }
  0x60   : > { %v245_v0 = vsel %vm244_vm6, 1, %v4555_v63  ;;  %v269_v11 = vadd.s32 %v267_v6, %v261_v51  ;;  %vm270_vm9 = vc.u32 %v268_v4, %v264_v54  ;;  %v369_v26 = vor.u32 %v368_v22, %v367_v9 }
  0x61   : > { %vm248_vm8 = vc.u32 %v246_v56, %v242_v47  ;;  %v247_v10 = vadd.s32 %v245_v0, %v239_v50  ;;  %v271_v18 = vsel %vm270_vm9, 1, %v4555_v63  ;;  %vm371_vm12 = vcmp.lt.s32.totalorder %v3211_v25, 2 }
  0x62   : > { %v249_v15 = vsel %vm248_vm8, 1, %v4555_v63  ;;  %v273_v57 = vadd.s32 %v271_v18, %v269_v11  ;;  %vm373_vm13 = vcmp.lt.s32.totalorder %v3211_v25, 4  ;;  %v241_v27 = vshrl.u32 %v237_v31, 16 }
  0x63   : > { %v251_v29 = vadd.s32 %v249_v15, %v247_v10  ;;  %v378_v34 = vsel %vm370_vm10, %v3230_v61, %v3237_v8  ;;  %v379_v39 = vsel %vm373_vm13, %v366_v20, 920167782  ;;  %v382_v41 = vsel %vm370_vm10, %v3237_v8, %v3240_v12 }
  0x64   : > { %v380_v19 = vsel %vm372_vm11, %v3240_v12, %v379_v39  ;;  %v387_v31 = vand.u32 65535, %v3215_v28  ;;  %v388_v36 = vshrl.u32 %v3215_v28, 16  ;;  %v199_v45 = vshrl.u32 %v4566_v38, %v3154_v37 }
  0x65   : > { %v220_v47 = vsel %vm218_vm3, %v3181_v60, 2102212464  ;;  %v381_v48 = vsel %vm371_vm12, %v378_v34, %v380_v19  ;;  %v383_v49 = vsel %vm373_vm13, %v369_v26, 1326507024  ;;  %v265_v50 = vshrl.u32 %v3221_v43, 16 }
  0x66   : > { %v274_v51 = vadd.s32 %v273_v57, %v263_v23  ;;  %v384_v52 = vsel %vm372_vm11, %v366_v20, %v383_v49  ;;  %v411_v56 = vand.u32 65535, %v381_v48  ;;  %v243_v62 = vshrl.u32 %v3217_v33, 16 }
  0x67   : > { %v252_v37 = vadd.s32 %v251_v29, %v241_v27  ;;  %v385_v0 = vsel %vm371_vm12, %v382_v41, %v384_v52  ;;  %v412_v60 = vshrl.u32 %v381_v48, 16  ;;  %vm504_vm14 = vcmp.gt.s32.totalorder %v503_v24, 0 }
  0x68   : > { %v389_v5 = vand.u32 65535, %v385_v0  ;;  %v390_v6 = vshrl.u32 %v385_v0, 16  ;;  %v219_v9 = vsel %vm215_vm2, %v199_v45, %v3177_v58  ;;  %v221_v43 = vsel %vm217_vm4, %v3179_v59, %v220_v47 }
  0x69   : > { %v414_v10 = vmul.u32 %v412_v60, %v387_v31  ;;  %v415_v11 = vmul.u32 %v411_v56, %v388_v36  ;;  %v275_v15 = vadd.s32 %v274_v51, %v265_v50  ;;  %v413_v20 = vmul.u32 %v411_v56, %v387_v31 }
  0x6a   : > { %v391_v33 = vmul.u32 %v389_v5, %v387_v31  ;;  %v392_v18 = vmul.u32 %v390_v6, %v387_v31  ;;  %v3286_v22 = vadd.s32 %v252_v37, %v243_v62  ;;  %v3288_v23 = vadd.s32 %v268_v4, %v264_v54 }
  0x6b   : > { %v393_v57 = vmul.u32 %v389_v5, %v388_v36  ;;  %v417_v26 = vshll.u32 %v414_v10, 16  ;;  %v394_v27 = vmul.u32 %v390_v6, %v388_v36  ;;  %v505_v34 = vsel %vm504_vm14, %v503_v24, 0 }
  0x6c   : > { %v395_v29 = vshll.u32 %v392_v18, 16  ;;  %v222_v58 = vsel %vm216_vm5, %v219_v9, %v221_v43  ;;  %v416_v59 = vmul.u32 %v412_v60, %v388_v36  ;;  %v419_v19 = vshll.u32 %v415_v11, 16 }
  0x6d   : > { %v397_v39 = vshll.u32 %v393_v57, 16  ;;  %v279_v41 = vadd.s32 1, %v275_v15  ;;  %vm421_vm0 = vc.u32 %v413_v20, %v417_v26  ;;  %vm278_vm1 = vc.u32 %v3286_v22, %v3288_v23 }
  0x6e   : > { %vm399_vm15 = vc.u32 %v391_v33, %v395_v29  ;;  %v401_v45 = vadd.s32 %v395_v29, %v391_v33  ;;  %v422_v4 = vsel %vm421_vm0, 1, %v4555_v63  ;;  %v423_v31 = vadd.s32 %v417_v26, %v413_v20 }
  0x6f   : > { %v400_v54 = vsel %vm399_vm15, 1, %v4555_v63  ;;  %v276_v24 = vmul.u32 %v3170_v53, %v222_v58  ;;  %v396_v47 = vshrl.u32 %v392_v18, 16  ;;  %v418_v48 = vshrl.u32 %v414_v10, 16 }
  0x70   : > { %v402_v35 = vadd.s32 %v400_v54, %v394_v27  ;;  %vm403_vm2 = vc.u32 %v401_v45, %v397_v39  ;;  %v424_v49 = vadd.s32 %v422_v4, %v416_v59  ;;  %vm425_vm3 = vc.u32 %v423_v31, %v419_v19 }
  0x71   : > { %v404_v36 = vsel %vm403_vm2, 1, %v4555_v63  ;;  %v280_v50 = vsel %vm278_vm1, %v279_v41, %v275_v15  ;;  %v426_v52 = vsel %vm425_vm3, 1, %v4555_v63  ;;  %v507_v56 = vand.u32 31, %v505_v34 }
  0x72   : > { %v406_v51 = vadd.s32 %v404_v36, %v402_v35  ;;  %v354_v62 = vshrl.u32 %v4566_v38, %v3205_v13  ;;  %v420_v37 = vshrl.u32 %v415_v11, 16  ;;  %v428_v0 = vadd.s32 %v426_v52, %v424_v49 }
  0x73   : > { %v375_v53 = vsel %vm373_vm13, %v3240_v12, 2102212464  ;;  %v398_v60 = vshrl.u32 %v393_v57, 16  ;;  %v281_v6 = vadd.s32 %v280_v50, %v276_v24  ;;  %v3304_v43 = vsub.s32 32, %v507_v56 }
  0x74   : > { %v407_v5 = vadd.s32 %v406_v51, %v396_v47  ;;  %v429_v9 = vadd.s32 %v428_v0, %v418_v48  ;;  %v374_v10 = vsel %vm370_vm10, %v354_v62, %v3230_v61  ;;  %v376_v13 = vsel %vm372_vm11, %v3237_v8, %v375_v53 }
  0x75   : > { %v3314_v33 = vadd.s32 %v423_v31, %v419_v19  ;;  %v282_v12 = vadd.s32 536870912, %v281_v6  ;;  %v493_v18 = vand.u32 2147483647, %v3149_v30  ;;  %v377_v20 = vsel %vm371_vm12, %v374_v10, %v376_v13 }
  0x76   : > { %v430_v11 = vadd.s32 %v429_v9, %v420_v37  ;;  %v3312_v15 = vadd.s32 %v407_v5, %v398_v60  ;;  %v3319_v57 = vshrl.u32 %v505_v34, 5  ;;  %v513_v26 = vshll.u32 %v4552_v40, %v507_v56 }
  0x77   : > { %v514_v61 = vshrl.u32 %v4548_v42, %v3304_v43  ;;  %v516_v8 = vshll.u32 %v4548_v42, %v507_v56  ;;  %v519_v29 = vshll.u32 %v4550_v44, %v507_v56  ;;  %v520_v58 = vshrl.u32 %v4546_v46, %v3304_v43 }
  0x78   : > { %v434_v27 = vadd.s32 1, %v430_v11  ;;  %vm433_vm4 = vc.u32 %v3312_v15, %v3314_v33  ;;  %v517_v25 = vshrl.u32 %v4550_v44, %v3304_v43  ;;  %v522_v34 = vshll.u32 %v4546_v46, %v507_v56 }
  0x79   : > { %v523_v39 = vshrl.u32 %v4544_v55, %v3304_v43  ;;  %v3335_v59 = vshrl.u32 %v282_v12, 30  ;;  %v500_v19 = vand.u32 8388607, %v493_v18  ;;  %v431_v41 = vmul.u32 %v3215_v28, %v377_v20 }
  0x7a   : > { %v510_v45 = vshll.u32 %v4566_v38, %v507_v56  ;;  %v511_v54 = vshrl.u32 %v4552_v40, %v3304_v43  ;;  %v435_v4 = vsel %vm433_vm4, %v434_v27, %v430_v11  ;;  %v521_v31 = vor.u32 %v520_v58, %v519_v29 }
  0x7b   : > { %v3343_v24 = vor.u32 %v514_v61, %v513_v26  ;;  %v3345_v47 = vor.u32 %v517_v25, %v516_v8  ;;  %v524_v35 = vor.u32 %v523_v39, %v522_v34  ;;  %vm528_vm5 = vcmp.lt.s32.totalorder %v3319_v57, 4 }
  0x7c   : > { %v284_v36 = vshll.u32 %v3335_v59, 30  ;;  %v501_v48 = vor.u32 8388608, %v500_v19  ;;  %vm525_vm6 = vcmp.lt.s32.totalorder %v3319_v57, 1  ;;  %v436_v28 = vadd.s32 %v435_v4, %v431_v41 }
  0x7d   : > { %v3350_v49 = vor.u32 %v511_v54, %v510_v45  ;;  %vm527_vm7 = vcmp.lt.s32.totalorder %v3319_v57, 3  ;;  %vm526_vm8 = vcmp.lt.s32.totalorder %v3319_v57, 2  ;;  %v534_v50 = vsel %vm528_vm5, %v521_v31, 920167782 }
  0x7e   : > { %v537_v51 = vsel %vm525_vm6, %v3343_v24, %v3345_v47  ;;  %v538_v52 = vsel %vm528_vm5, %v524_v35, 1326507024  ;;  %v3362_v56 = vsub.s32 %v281_v6, %v284_v36  ;;  %v3366_v37 = vshll.u32 %v501_v48, 8 }
  0x7f   : > { %v539_v62 = vsel %vm527_vm7, %v521_v31, %v538_v52  ;;  %v437_v0 = vadd.s32 536870912, %v436_v28  ;;  %v533_v53 = vsel %vm525_vm6, %v3350_v49, %v3343_v24  ;;  %v535_v60 = vsel %vm527_vm7, %v3345_v47, %v534_v50 }
  0x80   : > { %v540_v5 = vsel %vm526_vm8, %v537_v51, %v539_v62  ;;  %v542_v6 = vand.u32 65535, %v3366_v37  ;;  %v543_v9 = vshrl.u32 %v3366_v37, 16  ;;  %v144_v11 = vadd.s32 24, %v3119_v3 }
  0x81   : > { %v544_v10 = vand.u32 65535, %v540_v5  ;;  %v545_v13 = vshrl.u32 %v540_v5, 16  ;;  %v536_v12 = vsel %vm526_vm8, %v533_v53, %v535_v60  ;;  %v287_v26 = vsub.s32 0, %v3362_v56 }
  0x82   : > { %v3383_v61 = vshrl.u32 %v437_v0, 30  ;;  %vm286_vm9 = vcmp.lt.s32.totalorder %v3362_v56, 0  ;;  %v567_v25 = vshrl.u32 %v536_v12, 16  ;;  %v153_v34 = vadd.s32 %v3128_v7, %v144_v11 }
  0x83   : > { %v548_v20 = vmul.u32 %v544_v10, %v543_v9  ;;  %v546_v27 = vmul.u32 %v544_v10, %v542_v6  ;;  %v547_v8 = vmul.u32 %v545_v13, %v542_v6  ;;  %v549_v39 = vmul.u32 %v545_v13, %v543_v9 }
  0x84   : > { %v566_v19 = vand.u32 65535, %v536_v12  ;;  %v288_v41 = vsel %vm286_vm9, %v287_v26, %v3362_v56  ;;  %v439_v45 = vshll.u32 %v3383_v61, 30  ;;  %v569_v31 = vmul.u32 %v567_v25, %v542_v6 }
  0x85   : > { %v550_v29 = vshll.u32 %v547_v8, 16  ;;  %v552_v58 = vshll.u32 %v548_v20, 16  ;;  %v289_v35 = vclz %v288_v41  ;;  %v161_v50 = vcvt.s32.f32 %v153_v34 }
  0x86   : > { %v570_v48 = vmul.u32 %v566_v19, %v543_v9  ;;  %v3390_v51 = vsub.s32 %v436_v28, %v439_v45  ;;  %v568_v52 = vmul.u32 %v566_v19, %v542_v6  ;;  %v551_v0 = vshrl.u32 %v547_v8, 16 }
  0x87   : > { %vm554_vm10 = vc.u32 %v546_v27, %v550_v29  ;;  %v556_v54 = vadd.s32 %v550_v29, %v546_v27  ;;  %v571_v60 = vmul.u32 %v567_v25, %v543_v9  ;;  %v572_v5 = vshll.u32 %v569_v31, 16 }
  0x88   : > { %v555_v4 = vsel %vm554_vm10, 1, %v4555_v63  ;;  %v2787_v10 = vadd.s32 4294967294, %v289_v35  ;;  %v509_v13 = vshrl.u32 %v4566_v38, %v3304_v43  ;;  %v574_v11 = vshll.u32 %v570_v48, 16 }
  0x89   : > { %vm558_vm11 = vc.u32 %v556_v54, %v552_v58  ;;  %v557_v36 = vadd.s32 %v555_v4, %v549_v39  ;;  %v3396_v12 = vmul.f32 %v3133_v14, %v161_v50  ;;  %v442_v26 = vsub.s32 0, %v3390_v51 }
  0x8a   : > { %v559_v62 = vsel %vm558_vm11, 1, %v4555_v63  ;;  %vm576_vm12 = vc.u32 %v568_v52, %v572_v5  ;;  %vm441_vm13 = vcmp.lt.s32.totalorder %v3390_v51, 0  ;;  %v530_v28 = vsel %vm528_vm5, %v3345_v47, 2102212464 }
  0x8b   : > { %v561_v53 = vadd.s32 %v559_v62, %v557_v36  ;;  %v577_v6 = vsel %vm576_vm12, 1, %v4555_v63  ;;  %v578_v9 = vadd.s32 %v572_v5, %v568_v52  ;;  %v553_v27 = vshrl.u32 %v548_v20, 16 }
  0x8c   : > { %v579_v29 = vadd.s32 %v577_v6, %v571_v60  ;;  %vm2788_vm14 = vcmp.lt.s32.totalorder %v2787_v10, 0  ;;  %v529_v43 = vsel %vm525_vm6, %v509_v13, %v3350_v49  ;;  %v573_v58 = vshrl.u32 %v569_v31, 16 }
  0x8d   : > { %v562_v8 = vadd.s32 %v561_v53, %v551_v0  ;;  %vm580_vm15 = vc.u32 %v578_v9, %v574_v11  ;;  %v443_v25 = vsel %vm441_vm13, %v442_v26, %v3390_v51  ;;  %v531_v34 = vsel %vm527_vm7, %v3343_v24, %v530_v28 }
  0x8e   : > { %v581_v47 = vsel %vm580_vm15, 1, %v4555_v63  ;;  %v651_v39 = vand.u32 2139095040, %v3396_v12  ;;  %v575_v20 = vshrl.u32 %v570_v48, 16  ;;  %v292_v41 = vsel %vm2788_vm14, 0, %v2787_v10 }
  0x8f   : > { %v583_v19 = vadd.s32 %v581_v47, %v579_v29  ;;  %v3413_v45 = vadd.s32 %v562_v8, %v553_v27  ;;  %v3415_v54 = vadd.s32 %v578_v9, %v574_v11  ;;  %v444_v4 = vclz %v443_v25 }
  0x90   : > { %v652_v49 = vshrl.u32 %v651_v39, 23  ;;  %v532_v31 = vsel %vm526_vm8, %v529_v43, %v531_v34  ;;  %v145_v24 = vadd.s32 32, %v3119_v3  ;;  %v297_v50 = vsub.s32 4294967266, %v292_v41 }
  0x91   : > { %v584_v35 = vadd.s32 %v583_v19, %v573_v58  ;;  %v586_v62 = vmul.u32 %v3366_v37, %v532_v31  ;;  %vm588_vm0 = vc.u32 %v3413_v45, %v3415_v54  ;;  %v2790_v0 = vadd.s32 4294967294, %v444_v4 }
  0x92   : > { %v2795_v36 = vadd.s32 4294967169, %v652_v49  ;;  %v277_v60 = vadd.s32 %v3288_v23, %v3286_v22  ;;  %v293_v5 = vsub.s32 32, %v292_v41  ;;  %v154_v57 = vadd.s32 %v3128_v7, %v145_v24 }
  0x93   : > { %v585_v52 = vadd.s32 %v584_v35, %v575_v20  ;;  %v298_v10 = vadd.s32 127, %v297_v50  ;;  %v4543_v28 = vand.u32 2147483647, %v3396_v12  ;;  %vm2791_vm2 = vcmp.lt.s32.totalorder %v2790_v0, 0 }
  0x94   : > { %v658_v48 = vadd.s32 1, %v2795_v36  ;;  %v146_v6 = vadd.s32 40, %v3119_v3  ;;  %v294_v9 = vshll.u32 %v3362_v56, %v292_v41  ;;  %v295_v27 = vshrl.u32 %v277_v60, %v293_v5 }
  0x95   : > { %v589_v53 = vadd.s32 1, %v585_v52  ;;  %v147_v8 = vadd.s32 48, %v3119_v3  ;;  %v162_v22 = vcvt.s32.f32 %v154_v57  ;;  %v299_v23 = vshll.u32 %v298_v10, 23 }
  0x96   : > { %vm659_vm1 = vcmp.gt.s32.totalorder %v658_v48, 0  ;;  %v447_v43 = vsel %vm2791_vm2, 0, %v2790_v0  ;;  %v655_v25 = vand.u32 8388607, %v4543_v28  ;;  %v296_v19 = vor.u32 %v295_v27, %v294_v9 }
  0x97   : > { %v590_v13 = vsel %vm588_vm0, %v589_v53, %v585_v52  ;;  %v660_v11 = vsel %vm659_vm1, %v658_v48, 0  ;;  %v148_v31 = vadd.s32 56, %v3119_v3  ;;  %v3448_v35 = vmul.f32 %v3133_v14, %v162_v22 }
  0x98   : > { %v591_v26 = vadd.s32 %v590_v13, %v586_v62  ;;  %v662_v37 = vand.u32 31, %v660_v11  ;;  %v3441_v41 = vshrl.u32 %v660_v11, 5  ;;  %v300_v36 = vor.u32 4788187, %v299_v23 }
  0x99   : > { %v452_v50 = vsub.s32 4294967266, %v447_v43  ;;  %v656_v62 = vor.u32 8388608, %v655_v25  ;;  %v303_v5 = vcvt.s32.f32 %v296_v19  ;;  %v432_v57 = vadd.s32 %v3314_v33, %v3312_v15 }
  0x9a   : > { %v3430_v29 = vsub.s32 32, %v662_v37  ;;  %v592_v58 = vadd.s32 536870912, %v591_v26  ;;  %v665_v34 = vshll.u32 %v4566_v38, %v662_v37  ;;  %v668_v39 = vshll.u32 %v4552_v40, %v662_v37 }
  0x9b   : > { %v674_v20 = vshll.u32 %v4550_v44, %v662_v37  ;;  %v671_v49 = vshll.u32 %v4548_v42, %v662_v37  ;;  %v677_v60 = vshll.u32 %v4546_v46, %v662_v37  ;;  %vm680_vm3 = vcmp.lt.s32.totalorder %v3441_v41, 1 }
  0x9c   : > { %v666_v47 = vshrl.u32 %v4552_v40, %v3430_v29  ;;  %v669_v56 = vshrl.u32 %v4548_v42, %v3430_v29  ;;  %v672_v4 = vshrl.u32 %v4550_v44, %v3430_v29  ;;  %v675_v24 = vshrl.u32 %v4546_v46, %v3430_v29 }
  0x9d   : > { %v3452_v52 = vshrl.u32 %v592_v58, 30  ;;  %v678_v3 = vshrl.u32 %v4544_v55, %v3430_v29  ;;  %v301_v13 = vand.u32 2147483647, %v300_v36  ;;  %v448_v11 = vsub.s32 32, %v447_v43 }
  0x9e   : > { %v3454_v48 = vor.u32 %v666_v47, %v665_v34  ;;  %v3456_v0 = vor.u32 %v669_v56, %v668_v39  ;;  %v676_v53 = vor.u32 %v675_v24, %v674_v20  ;;  %v673_v10 = vor.u32 %v672_v4, %v671_v49 }
  0x9f   : > { %vm682_vm4 = vcmp.lt.s32.totalorder %v3441_v41, 3  ;;  %vm683_vm5 = vcmp.lt.s32.totalorder %v3441_v41, 4  ;;  %v453_v9 = vadd.s32 127, %v452_v50  ;;  %v594_v27 = vshll.u32 %v3452_v52, 30 }
  0xa0   : > { %v3467_v37 = vshll.u32 %v656_v62, 8  ;;  %v806_v22 = vand.u32 2139095040, %v3448_v35  ;;  %v679_v23 = vor.u32 %v678_v3, %v677_v60  ;;  %vm681_vm6 = vcmp.lt.s32.totalorder %v3441_v41, 2 }
  0xa1   : > { %v688_v15 = vsel %vm680_vm3, %v3454_v48, %v3456_v0  ;;  %v689_v33 = vsel %vm683_vm5, %v676_v53, 920167782  ;;  %v3478_v58 = vadd.s32 %v3128_v7, %v146_v6  ;;  %v3483_v34 = vadd.s32 %v3128_v7, %v147_v8 }
  0xa2   : > { %v690_v25 = vsel %vm682_vm4, %v673_v10, %v689_v33  ;;  %v304_v47 = vmul.f32 %v303_v5, %v301_v13  ;;  %v449_v39 = vshll.u32 %v3390_v51, %v447_v43  ;;  %v450_v56 = vshrl.u32 %v432_v57, %v448_v11 }
  0xa3   : > { %v3486_v20 = vsub.s32 %v591_v26, %v594_v27  ;;  %v691_v19 = vsel %vm681_vm6, %v688_v15, %v690_v25  ;;  %v692_v6 = vsel %vm680_vm3, %v3456_v0, %v673_v10  ;;  %v807_v49 = vshrl.u32 %v806_v22, 23 }
  0xa4   : > { %v3494_v4 = vadd.s32 %v3128_v7, %v148_v31  ;;  %v454_v36 = vshll.u32 %v453_v9, 23  ;;  %v693_v8 = vsel %vm683_vm5, %v679_v23, 1326507024  ;;  %v697_v51 = vand.u32 65535, %v3467_v37 }
  0xa5   : > { %v694_v26 = vsel %vm682_vm4, %v676_v53, %v693_v8  ;;  %v698_v43 = vshrl.u32 %v3467_v37, 16  ;;  %v721_v24 = vand.u32 65535, %v691_v19  ;;  %v722_v50 = vshrl.u32 %v691_v19, 16 }
  0xa6   : > { %v163_v62 = vcvt.s32.f32 %v3478_v58  ;;  %v305_v60 = vxor.u32 2147483648, %v304_v47  ;;  %v3503_v3 = vor.u32 %v450_v56, %v449_v39  ;;  %v695_v7 = vsel %vm681_vm6, %v692_v6, %v694_v26 }
  0xa7   : > { %vm185_vm7 = vcmp.lt.s32.totalorder %v3137_v16, 0  ;;  %v597_v31 = vsub.s32 0, %v3486_v20  ;;  %v699_v5 = vand.u32 65535, %v695_v7  ;;  %v2798_v57 = vadd.s32 4294967169, %v807_v49 }
  0xa8   : > { %v455_v13 = vor.u32 4788187, %v454_v36  ;;  %vm596_vm8 = vcmp.lt.s32.totalorder %v3486_v20, 0  ;;  %v664_v53 = vshrl.u32 %v4566_v38, %v3430_v29  ;;  %v700_v11 = vshrl.u32 %v695_v7, 16 }
  0xa9   : > { %v703_v9 = vmul.u32 %v699_v5, %v698_v43  ;;  %v723_v27 = vmul.u32 %v721_v24, %v697_v51  ;;  %v724_v22 = vmul.u32 %v722_v50, %v697_v51  ;;  %v725_v23 = vmul.u32 %v721_v24, %v698_v43 }
  0xaa   : > { %v306_v15 = vsel %vm185_vm7, %v305_v60, %v304_v47  ;;  %v458_v33 = vcvt.s32.f32 %v3503_v3  ;;  %v701_v25 = vmul.u32 %v699_v5, %v697_v51  ;;  %v702_v39 = vmul.u32 %v700_v11, %v697_v51 }
  0xab   : > { %vm3517_vm9 = vcmp.le.f32.partialorder %v183_v21, 0.7853982  ;;  %v598_v29 = vsel %vm596_vm8, %v597_v31, %v3486_v20  ;;  %v726_v19 = vmul.u32 %v722_v50, %v698_v43  ;;  %v727_v6 = vshll.u32 %v724_v22, 16 }
  0xac   : > { %v813_v49 = vadd.s32 1, %v2798_v57  ;;  %v685_v36 = vsel %vm683_vm5, %v673_v10, 2102212464  ;;  %v704_v8 = vmul.u32 %v700_v11, %v698_v43  ;;  %v705_v47 = vshll.u32 %v702_v39, 16 }
  0xad   : > { %v707_v26 = vshll.u32 %v703_v9, 16  ;;  %v456_v24 = vand.u32 2147483647, %v455_v13  ;;  %v684_v51 = vsel %vm680_vm3, %v664_v53, %v3454_v48  ;;  %v729_v21 = vshll.u32 %v725_v23, 16 }
  0xae   : > { %vm731_vm10 = vc.u32 %v723_v27, %v727_v6  ;;  %v599_v60 = vclz %v598_v29  ;;  %vm709_vm11 = vc.u32 %v701_v25, %v705_v47  ;;  %v711_v3 = vadd.s32 %v705_v47, %v701_v25 }
  0xaf   : > { %v732_v50 = vsel %vm731_vm10, 1, %v4555_v63  ;;  %v686_v7 = vsel %vm682_vm4, %v3456_v0, %v685_v36  ;;  %v710_v10 = vsel %vm709_vm11, 1, %v4555_v63  ;;  %v733_v43 = vadd.s32 %v727_v6, %v723_v27 }
  0xb0   : > { %v734_v31 = vadd.s32 %v732_v50, %v726_v19  ;;  %v706_v5 = vshrl.u32 %v702_v39, 16  ;;  %v712_v57 = vadd.s32 %v710_v10, %v704_v8  ;;  %vm713_vm12 = vc.u32 %v711_v3, %v707_v26 }
  0xb1   : > { %vm814_vm13 = vcmp.gt.s32.totalorder %v813_v49, 0  ;;  %v714_v48 = vsel %vm713_vm12, 1, %v4555_v63  ;;  %v728_v13 = vshrl.u32 %v724_v22, 16  ;;  %vm735_vm14 = vc.u32 %v733_v43, %v729_v21 }
  0xb2   : > { %v815_v53 = vsel %vm814_vm13, %v813_v49, 0  ;;  %v708_v11 = vshrl.u32 %v703_v9, 16  ;;  %v716_v25 = vadd.s32 %v714_v48, %v712_v57  ;;  %v736_v29 = vsel %vm735_vm14, 1, %v4555_v63 }
  0xb3   : > { %v4542_v47 = vand.u32 2147483647, %v3448_v35  ;;  %v2793_v0 = vadd.s32 4294967294, %v599_v60  ;;  %v730_v36 = vshrl.u32 %v725_v23, 16  ;;  %v738_v2 = vadd.s32 %v736_v29, %v734_v31 }
  0xb4   : > { %v817_v27 = vand.u32 31, %v815_v53  ;;  %v164_v39 = vcvt.s32.f32 %v3483_v34  ;;  %v687_v19 = vsel %vm681_vm6, %v684_v51, %v686_v7  ;;  %v717_v6 = vadd.s32 %v716_v25, %v706_v5 }
  0xb5   : > { %v3538_v8 = vadd.s32 %v733_v43, %v729_v21  ;;  %v165_v22 = vcvt.s32.f32 %v3494_v4  ;;  %vm340_vm15 = vcmp.lt.s32.totalorder %v3140_v17, 0  ;;  %v739_v9 = vadd.s32 %v738_v2, %v728_v13 }
  0xb6   : > { %v3542_v49 = vsub.s32 32, %v817_v27  ;;  %v3547_v23 = vsel %vm3517_vm9, %v3137_v16, %v306_v15  ;;  %v459_v26 = vmul.f32 %v458_v33, %v456_v24  ;;  %v3549_v60 = vadd.s32 %v717_v6, %v708_v11 }
  0xb7   : > { %v810_v41 = vand.u32 8388607, %v4542_v47  ;;  %vm2794_vm0 = vcmp.lt.s32.totalorder %v2793_v0, 0  ;;  %v740_v51 = vadd.s32 %v739_v9, %v730_v36  ;;  %v741_v21 = vmul.u32 %v3467_v37, %v687_v19 }
  0xb8   : > { %v820_v3 = vshll.u32 %v4566_v38, %v817_v27  ;;  %vm743_vm1 = vc.u32 %v3549_v60, %v3538_v8  ;;  %v821_v2 = vshrl.u32 %v4552_v40, %v3542_v49  ;;  %v823_v15 = vshll.u32 %v4552_v40, %v817_v27 }
  0xb9   : > { %v824_v33 = vshrl.u32 %v4548_v42, %v3542_v49  ;;  %v744_v24 = vadd.s32 1, %v740_v51  ;;  %v3562_v50 = vshrl.u32 %v815_v53, 5  ;;  %v826_v7 = vshll.u32 %v4548_v42, %v817_v27 }
  0xba   : > { %v827_v37 = vshrl.u32 %v4550_v44, %v3542_v49  ;;  %v3569_v10 = vmul.f32 %v3547_v23, %v3547_v23  ;;  %v460_v43 = vxor.u32 2147483648, %v459_v26  ;;  %v829_v31 = vshll.u32 %v4550_v44, %v817_v27 }
  0xbb   : > { %v830_v5 = vshrl.u32 %v4546_v46, %v3542_v49  ;;  %v745_v57 = vsel %vm743_vm1, %v744_v24, %v740_v51  ;;  %v811_v48 = vor.u32 8388608, %v810_v41  ;;  %v832_v13 = vshll.u32 %v4546_v46, %v817_v27 }
  0xbc   : > { %v833_v53 = vshrl.u32 %v4544_v55, %v3542_v49  ;;  %v602_v11 = vsel %vm2794_vm0, 0, %v2793_v0  ;;  %v3578_v25 = vadd.s32 %v745_v57, %v741_v21  ;;  %v3580_v29 = vor.u32 %v821_v2, %v820_v3 }
  0xbd   : > { %v3582_v36 = vor.u32 %v824_v33, %v823_v15  ;;  %v3584_v19 = vor.u32 %v827_v37, %v826_v7  ;;  %v831_v6 = vor.u32 %v830_v5, %v829_v31  ;;  %vm835_vm2 = vcmp.lt.s32.totalorder %v3562_v50, 1 }
  0xbe   : > { %v834_v9 = vor.u32 %v833_v53, %v832_v13  ;;  %v319_v41 = vmul.f32 -0.00019511016, %v3569_v10  ;;  %vm3590_vm3 = vcmp.le.f32.partialorder %v338_v32, 0.7853982  ;;  %vm837_vm4 = vcmp.lt.s32.totalorder %v3562_v50, 3 }
  0xbf   : > { %vm838_vm5 = vcmp.lt.s32.totalorder %v3562_v50, 4  ;;  %v307_v0 = vsub.s32 4, %v3335_v59  ;;  %v461_v51 = vsel %vm340_vm15, %v460_v43, %v459_v26  ;;  %v607_v21 = vsub.s32 4294967266, %v602_v11 }
  0xc0   : > { %v844_v3 = vsel %vm838_vm5, %v831_v6, 920167782  ;;  %v312_v2 = vmul.f32 -0.001358992, %v3569_v10  ;;  %v747_v32 = vadd.s32 536870912, %v3578_v25  ;;  %vm836_vm6 = vcmp.lt.s32.totalorder %v3562_v50, 2 }
  0xc1   : > { %v843_v15 = vsel %vm835_vm2, %v3580_v29, %v3582_v36  ;;  %v462_v33 = vsub.s32 4, %v3383_v61  ;;  %v845_v26 = vsel %vm837_vm4, %v3584_v19, %v844_v3  ;;  %v848_v24 = vsel %vm838_vm5, %v834_v9, 1326507024 }
  0xc2   : > { %v3614_v7 = vshll.u32 %v811_v48, 8  ;;  %v320_v37 = vadd.f32 0.008332121, %v319_v41  ;;  %v3619_v43 = vsel %vm3590_vm3, %v3140_v17, %v461_v51  ;;  %v587_v31 = vadd.s32 %v3415_v54, %v3413_v45 }
  0xc3   : > { %v847_v5 = vsel %vm835_vm2, %v3582_v36, %v3584_v19  ;;  %v603_v57 = vsub.s32 32, %v602_v11  ;;  %v608_v13 = vadd.s32 127, %v607_v21  ;;  %v846_v48 = vsel %vm836_vm6, %v843_v15, %v845_v26 }
  0xc4   : > { %v849_v53 = vsel %vm837_vm4, %v831_v6, %v848_v24  ;;  %v3634_v9 = vmul.f32 %v3133_v14, %v163_v62  ;;  %v308_v45 = vsel %vm185_vm7, %v307_v0, %v3335_v59  ;;  %v313_v54 = vadd.f32 0.041655596, %v312_v2 }
  0xc5   : > { %v3639_v41 = vshrl.u32 %v747_v32, 30  ;;  %v463_v51 = vsel %vm340_vm15, %v462_v33, %v3383_v61  ;;  %v850_v21 = vsel %vm836_vm6, %v847_v5, %v849_v53  ;;  %v852_v6 = vand.u32 65535, %v3614_v7 }
  0xc6   : > { %v877_v58 = vshrl.u32 %v846_v48, 16  ;;  %v321_v62 = vmul.f32 %v320_v37, %v3569_v10  ;;  %v3650_v3 = vmul.f32 %v3619_v43, %v3619_v43  ;;  %v604_v59 = vshll.u32 %v3486_v20, %v602_v11 }
  0xc7   : > { %v853_v0 = vshrl.u32 %v3614_v7, 16  ;;  %v605_v2 = vshrl.u32 %v587_v31, %v603_v57  ;;  %v609_v32 = vshll.u32 %v608_v13, 23  ;;  %v854_v15 = vand.u32 65535, %v850_v21 }
  0xc8   : > { %v855_v61 = vshrl.u32 %v850_v21, 16  ;;  %v3656_v33 = vsel %vm3517_vm9, 0, %v308_v45  ;;  %v314_v26 = vmul.f32 %v313_v54, %v3569_v10  ;;  %v749_v24 = vshll.u32 %v3639_v41, 30 }
  0xc9   : > { %4596 = vst [vmem:[#allocation9_spill] sm:$0xff] %v3656_v33  ;;  %v876_v37 = vand.u32 65535, %v846_v48  ;;  %v3662_v5 = vsel %vm3590_vm3, 0, %v463_v51  ;;  %v856_v20 = vmul.u32 %v854_v15, %v852_v6  ;;  %v879_v53 = vmul.u32 %v877_v58, %v852_v6 }
  0xca   : > { %4597 = vst [vmem:[#allocation10_spill] sm:$0xff] %v3662_v5  ;;  %v857_v11 = vmul.u32 %v855_v61, %v852_v6  ;;  %v322_v31 = vadd.f32 -0.16666654, %v321_v62  ;;  %v467_v57 = vmul.f32 -0.001358992, %v3650_v3  ;;  %v858_v56 = vmul.u32 %v854_v15, %v853_v0 }
  0xcb   : > { %v474_v13 = vmul.f32 -0.00019511016, %v3650_v3  ;;  %v606_v45 = vor.u32 %v605_v2, %v604_v59  ;;  %v610_v21 = vor.u32 4788187, %v609_v32  ;;  %v859_v47 = vmul.u32 %v855_v61, %v853_v0 }
  0xcc   : > { %v860_v54 = vshll.u32 %v857_v11, 16  ;;  %v315_v28 = vadd.f32 -0.4999988, %v314_v26  ;;  %v3667_v48 = vsub.s32 %v3578_v25, %v749_v24  ;;  %v862_v27 = vshll.u32 %v858_v56, 16 }
  0xcd   : > { %v880_v51 = vmul.u32 %v876_v37, %v853_v0  ;;  %v878_v46 = vmul.u32 %v876_v37, %v852_v6  ;;  %v882_v42 = vshll.u32 %v879_v53, 16  ;;  %v323_v62 = vmul.f32 %v322_v31, %v3569_v10 }
  0xce   : > { %vm864_vm7 = vc.u32 %v856_v20, %v860_v54  ;;  %v866_v55 = vadd.s32 %v860_v54, %v856_v20  ;;  %v468_v44 = vadd.f32 0.041655596, %v467_v57  ;;  %v475_v40 = vadd.f32 0.008332121, %v474_v13 }
  0xcf   : > { %v865_v15 = vsel %vm864_vm7, 1, %v4555_v63  ;;  %v611_v59 = vand.u32 2147483647, %v610_v21  ;;  %v613_v2 = vcvt.s32.f32 %v606_v45  ;;  %v881_v61 = vmul.u32 %v877_v58, %v853_v0 }
  0xd0   : > { %v867_v32 = vadd.s32 %v865_v15, %v859_v47  ;;  %v752_v26 = vsub.s32 0, %v3667_v48  ;;  %v861_v25 = vshrl.u32 %v857_v11, 16  ;;  %vm868_vm8 = vc.u32 %v866_v55, %v862_v27 }
  0xd1   : > { %v884_v24 = vshll.u32 %v880_v51, 16  ;;  %vm751_vm9 = vcmp.lt.s32.totalorder %v3667_v48, 0  ;;  %v819_v6 = vshrl.u32 %v4566_v38, %v3542_v49  ;;  %v869_v37 = vsel %vm868_vm8, 1, %v4555_v63 }
  0xd2   : > { %vm886_vm10 = vc.u32 %v878_v46, %v882_v42  ;;  %v840_v20 = vsel %vm838_vm5, %v3584_v19, 2102212464  ;;  %v871_v31 = vadd.s32 %v869_v37, %v867_v32  ;;  %v888_v58 = vadd.s32 %v882_v42, %v878_v46 }
  0xd3   : > { %v887_v47 = vsel %vm886_vm10, 1, %v4555_v63  ;;  %v469_v0 = vmul.f32 %v468_v44, %v3650_v3  ;;  %v863_v55 = vshrl.u32 %v858_v56, 16  ;;  %v961_v57 = vand.u32 2139095040, %v3634_v9 }
  0xd4   : > { %v889_v11 = vadd.s32 %v887_v47, %v881_v61  ;;  %v753_v13 = vsel %vm751_vm9, %v752_v26, %v3667_v48  ;;  %v872_v49 = vadd.s32 %v871_v31, %v861_v25  ;;  %v883_v45 = vshrl.u32 %v879_v53, 16 }
  0xd5   : > { %vm890_vm11 = vc.u32 %v888_v58, %v884_v24  ;;  %v839_v21 = vsel %vm835_vm2, %v819_v6, %v3580_v29  ;;  %v841_v19 = vsel %vm837_vm4, %v3582_v36, %v840_v20  ;;  %v962_v44 = vshrl.u32 %v961_v57, 23 }
  0xd6   : > { %v891_v42 = vsel %vm890_vm11, 1, %v4555_v63  ;;  %v316_v46 = vmul.f32 %v315_v28, %v3569_v10  ;;  %v614_v56 = vmul.f32 %v613_v2, %v611_v59  ;;  %v885_v54 = vshrl.u32 %v880_v51, 16 }
  0xd7   : > { %v893_v27 = vadd.s32 %v891_v42, %v889_v11  ;;  %v754_v15 = vclz %v753_v13  ;;  %v3691_v32 = vadd.s32 %v872_v49, %v863_v55  ;;  %v3693_v53 = vadd.s32 %v888_v58, %v884_v24 }
  0xd8   : > { %v2801_v61 = vadd.s32 4294967169, %v962_v44  ;;  %v324_v26 = vadd.f32 1.0, %v323_v62  ;;  %v476_v29 = vmul.f32 %v475_v40, %v3650_v3  ;;  %v842_v36 = vsel %vm836_vm6, %v839_v21, %v841_v19 }
  0xd9   : > { %v894_v25 = vadd.s32 %v893_v27, %v883_v45  ;;  %v327_v6 = vadd.s32 3, %v3656_v33  ;;  %v470_v37 = vadd.f32 -0.4999988, %v469_v0  ;;  %vm495_vm12 = vcmp.lt.s32.totalorder %v3149_v30, 0 }
  0xda   : > { %v968_v28 = vadd.s32 1, %v2801_v61  ;;  %v3700_v10 = vadd.f32 1.0, %v316_v46  ;;  %v482_v51 = vadd.s32 3, %v3662_v5  ;;  %v615_v59 = vxor.u32 2147483648, %v614_v56 }
  0xdb   : > { %v895_v2 = vadd.s32 %v894_v25, %v885_v54  ;;  %v2796_v24 = vadd.s32 4294967294, %v754_v15  ;;  %v896_v62 = vmul.u32 %v3614_v7, %v842_v36  ;;  %vm898_vm13 = vc.u32 %v3691_v32, %v3693_v53 }
  0xdc   : > { %4598 = vst [vmem:[#allocation11_spill] sm:$0xff] %v3700_v10  ;;  %vm969_vm14 = vcmp.gt.s32.totalorder %v968_v28, 0  ;;  %v3707_v40 = vmul.f32 %v324_v26, %v3547_v23  ;;  %v477_v50 = vadd.f32 -0.16666654, %v476_v29  ;;  %v3712_v47 = vmul.f32 %v3133_v14, %v164_v39 }
  0xdd   : > { %v899_v20 = vadd.s32 1, %v895_v2  ;;  %v970_v31 = vsel %vm969_vm14, %v968_v28, 0  ;;  %v3717_v58 = vmul.f32 %v3133_v14, %v165_v22  ;;  %v471_v7 = vmul.f32 %v470_v37, %v3650_v3 }
  0xde   : > { %4599 = vst [vmem:[#allocation12_spill] sm:$0xff] %v3707_v40  ;;  %v972_v0 = vand.u32 31, %v970_v31  ;;  %v3720_v55 = vand.u32 3, %v327_v6  ;;  %vm3724_vm15 = vcmp.le.f32.partialorder %v493_v18, 0.7853982  ;;  %v616_v34 = vsel %vm495_vm12, %v615_v59, %v614_v56 }
  0xdf   : > { %4600 = vst [vmem:[#allocation13_spill] sm:$0xff] %v3717_v58  ;;  %v900_v39 = vsel %vm898_vm13, %v899_v20, %v895_v2  ;;  %v3730_v11 = vand.u32 3, %v482_v51  ;;  %vm2797_vm0 = vcmp.lt.s32.totalorder %v2796_v24, 0  ;;  %v4558_v22 = vxor.u32 2147483648, %v3707_v40 }
  0xe0   : > { %v901_v14 = vadd.s32 %v900_v39, %v896_v62  ;;  %v3732_v4 = vsub.s32 32, %v972_v0  ;;  %v4557_v57 = vxor.u32 2147483648, %v3700_v10  ;;  %v478_v13 = vmul.f32 %v477_v50, %v3650_v3 }
  0xe1   : > { %v4554_v18 = vand.u32 2147483647, %v3634_v9  ;;  %v3738_v49 = vadd.f32 1.0, %v471_v7  ;;  %v617_v45 = vsub.s32 4, %v3452_v52  ;;  %v3744_v21 = vsel %vm3724_vm15, %v3149_v30, %v616_v34 }
  0xe2   : > { %v902_v19 = vadd.s32 536870912, %v901_v14  ;;  %v757_v42 = vsel %vm2797_vm0, 0, %v2796_v24  ;;  %v975_v44 = vshll.u32 %v4566_v38, %v972_v0  ;;  %v4604_v46 = vmov 2475754826  }
  0xe3   : > { %4603 = vst [vmem:[#allocation14_spill] sm:$0xff] %v3738_v49  ;;  %v978_v56 = vshll.u32 %v4604_v46, %v972_v0  ;;  %v4605_v54 = vmov 2102212464   ;;  %v976_v15 = vshrl.u32 %v4604_v46, %v3732_v4  ;;  %v4606_v61 = vmov 2131351028  }
  0xe4   : > { %v984_v27 = vshll.u32 %v4605_v54, %v972_v0  ;;  %v3749_v3 = vshrl.u32 %v902_v19, 30  ;;  %v979_v26 = vshrl.u32 %v4606_v61, %v3732_v4  ;;  %v4607_v29 = vmov 920167782  }
  0xe5   : > { %v985_v36 = vshrl.u32 %v4607_v29, %v3732_v4  ;;  %v965_v25 = vand.u32 8388607, %v4554_v18  ;;  %v3759_v6 = vshrl.u32 %v970_v31, 5  ;;  %v981_v37 = vshll.u32 %v4606_v61, %v972_v0 }
  0xe6   : > { %v982_v28 = vshrl.u32 %v4605_v54, %v3732_v4  ;;  %v479_v51 = vadd.f32 1.0, %v478_v13  ;;  %v3766_v59 = vmul.f32 %v3744_v21, %v3744_v21  ;;  %v904_v2 = vshll.u32 %v3749_v3, 30 }
  0xe7   : > { %v987_v24 = vshll.u32 %v4607_v29, %v972_v0  ;;  %vm333_vm1 = vcmp.eq.s32.totalorder %v3720_v55, 2  ;;  %v742_v62 = vadd.s32 %v3538_v8, %v3549_v60  ;;  %v758_v50 = vsub.s32 32, %v757_v42 }
  0xe8   : > { %v986_v20 = vor.u32 %v985_v36, %v984_v27  ;;  %v4608_v31 = vmov 1326507024   ;;  %vm330_vm2 = vcmp.eq.s32.totalorder %v3720_v55, 0  ;;  %vm488_vm3 = vcmp.eq.s32.totalorder %v3730_v11, 2 }
  0xe9   : > { %v988_v7 = vshrl.u32 %v4608_v31, %v3732_v4  ;;  %v762_v34 = vsub.s32 4294967266, %v757_v42  ;;  %v3777_v39 = vsub.s32 %v901_v14, %v904_v2  ;;  %v3779_v13 = vor.u32 %v976_v15, %v975_v44 }
  0xea   : > { %v3781_v0 = vor.u32 %v979_v26, %v978_v56  ;;  %v966_v19 = vor.u32 8388608, %v965_v25  ;;  %v3783_v18 = vor.u32 %v982_v28, %v981_v37  ;;  %vm990_vm4 = vcmp.lt.s32.totalorder %v3759_v6, 1 }
  0xeb   : > { %vm993_vm5 = vcmp.lt.s32.totalorder %v3759_v6, 4  ;;  %v629_v8 = vmul.f32 -0.00019511016, %v3766_v59  ;;  %v907_v60 = vsub.s32 0, %v3777_v39  ;;  %v989_v27 = vor.u32 %v988_v7, %v987_v24 }
  0xec   : > { %vm992_vm6 = vcmp.lt.s32.totalorder %v3759_v6, 3  ;;  %v759_v14 = vshll.u32 %v3667_v48, %v757_v42  ;;  %v760_v44 = vshrl.u32 %v742_v62, %v758_v50  ;;  %vm906_vm7 = vcmp.lt.s32.totalorder %v3777_v39, 0 }
  0xed   : > { %v999_v56 = vsel %vm993_vm5, %v986_v20, 920167782  ;;  %v763_v15 = vadd.s32 127, %v762_v34  ;;  %vm991_vm8 = vcmp.lt.s32.totalorder %v3759_v6, 2  ;;  %v998_v26 = vsel %vm990_vm4, %v3779_v13, %v3781_v0 }
  0xee   : > { %v1116_v36 = vand.u32 2139095040, %v3712_v47  ;;  %v618_v48 = vsel %vm495_vm12, %v617_v45, %v3452_v52  ;;  %v1000_v42 = vsel %vm992_vm6, %v3783_v18, %v999_v56  ;;  %v1002_v25 = vsel %vm990_vm4, %v3781_v0, %v3783_v18 }
  0xef   : > { %v3810_v37 = vshll.u32 %v966_v19, 8  ;;  %v3813_v28 = vmul.f32 %v479_v51, %v3619_v43  ;;  %v4559_v2 = vxor.u32 2147483648, %v3738_v49  ;;  %v908_v24 = vsel %vm906_vm7, %v907_v60, %v3777_v39 }
  0xf0   : > { %v1003_v52 = vsel %vm993_vm5, %v989_v27, 1326507024  ;;  %v622_v45 = vmul.f32 -0.001358992, %v3766_v59  ;;  %v630_v62 = vadd.f32 0.008332121, %v629_v8  ;;  %v1001_v50 = vsel %vm991_vm8, %v998_v26, %v1000_v42 }
  0xf1   : > { %4609 = vst [vmem:[#allocation15_spill] sm:$0xff] %v3813_v28  ;;  %v1004_v7 = vsel %vm992_vm6, %v986_v20, %v1003_v52  ;;  %v761_v34 = vor.u32 %v760_v44, %v759_v14  ;;  %v764_v19 = vshll.u32 %v763_v15, 23  ;;  %v1117_v51 = vshrl.u32 %v1116_v36, 23 }
  0xf2   : > { %v1005_v43 = vsel %vm991_vm8, %v1002_v25, %v1004_v7  ;;  %v909_v56 = vclz %v908_v24  ;;  %v1007_v60 = vand.u32 65535, %v3810_v37  ;;  %v3832_v8 = vsel %vm333_vm1, %v4557_v57, %v3707_v40 }
  0xf3   : > { %v1009_v63 = vand.u32 65535, %v1005_v43  ;;  %v1010_v27 = vshrl.u32 %v1005_v43, 16  ;;  %v1008_v20 = vshrl.u32 %v3810_v37, 16  ;;  %v1031_v14 = vand.u32 65535, %v1001_v50 }
  0xf4   : > { %v1032_v44 = vshrl.u32 %v1001_v50, 16  ;;  %v3840_v15 = vsel %vm330_vm2, %v3700_v10, %v4558_v22  ;;  %v3848_v36 = vsel %vm488_vm3, %v4559_v2, %v3813_v28  ;;  %v3852_v42 = vsel %vm3724_vm15, 0, %v618_v48 }
  0xf5   : > { %4610 = vst [vmem:[#allocation16_spill] sm:$0xff] %v3852_v42  ;;  %v623_v25 = vadd.f32 0.041655596, %v622_v45  ;;  %v631_v24 = vmul.f32 %v630_v62, %v3766_v59  ;;  %v765_v52 = vor.u32 4788187, %v764_v19  ;;  %v2804_v50 = vadd.s32 4294967169, %v1117_v51 }
  0xf6   : > { %vm485_vm9 = vcmp.eq.s32.totalorder %v3730_v11, 0  ;;  %v768_v7 = vcvt.s32.f32 %v761_v34  ;;  %v2799_v43 = vadd.s32 4294967294, %v909_v56  ;;  %v1011_v57 = vmul.u32 %v1009_v63, %v1007_v60 }
  0xf7   : > { %v1012_v22 = vmul.u32 %v1010_v27, %v1007_v60  ;;  %v974_v26 = vshrl.u32 %v4566_v38, %v3732_v4  ;;  %v1013_v2 = vmul.u32 %v1009_v63, %v1008_v20  ;;  %v1034_v1 = vmul.u32 %v1032_v44, %v1007_v60 }
  0xf8   : > { %v1035_v10 = vmul.u32 %v1031_v14, %v1008_v20  ;;  %v1014_v23 = vmul.u32 %v1010_v27, %v1008_v20  ;;  %v1033_v40 = vmul.u32 %v1031_v14, %v1007_v60  ;;  %v766_v62 = vand.u32 2147483647, %v765_v52 }
  0xf9   : > { %v1015_v48 = vshll.u32 %v1012_v22, 16  ;;  %v1017_v19 = vshll.u32 %v1013_v2, 16  ;;  %v1037_v51 = vshll.u32 %v1034_v1, 16  ;;  %v1123_v5 = vadd.s32 1, %v2804_v50 }
  0xfa   : > { %vm2800_vm10 = vcmp.lt.s32.totalorder %v2799_v43, 0  ;;  %v1036_v56 = vmul.u32 %v1032_v44, %v1008_v20  ;;  %v994_v4 = vsel %vm990_vm4, %v974_v26, %v3779_v13  ;;  %v995_v63 = vsel %vm993_vm5, %v3783_v18, 2102212464 }
  0xfb   : > { %vm1019_vm11 = vc.u32 %v1011_v57, %v1015_v48  ;;  %v1021_v34 = vadd.s32 %v1015_v48, %v1011_v57  ;;  %v4611_v27 = vmov 0   ;;  %v1039_v14 = vshll.u32 %v1035_v10, 16 }
  0xfc   : > { %v1020_v60 = vsel %vm1019_vm11, 1, %v4611_v27  ;;  %v1016_v38 = vshrl.u32 %v1012_v22, 16  ;;  %vm1041_vm13 = vc.u32 %v1033_v40, %v1037_v51  ;;  %v3866_v50 = vsel %vm2800_vm10, 0, %v2799_v43 }
  0xfd   : > { %v1022_v52 = vadd.s32 %v1020_v60, %v1014_v23  ;;  %vm1023_vm12 = vc.u32 %v1021_v34, %v1017_v19  ;;  %v1042_v20 = vsel %vm1041_vm13, 1, %v4611_v27  ;;  %v1043_v44 = vadd.s32 %v1037_v51, %v1033_v40 }
  0xfe   : > { %v1024_v57 = vsel %vm1023_vm12, 1, %v4611_v27  ;;  %v1018_v48 = vshrl.u32 %v1013_v2, 16  ;;  %v1044_v26 = vadd.s32 %v1042_v20, %v1036_v56  ;;  %vm1124_vm14 = vcmp.gt.s32.totalorder %v1123_v5, 0 }
  0xff   : > { %v1026_v13 = vadd.s32 %v1024_v57, %v1022_v52  ;;  %v996_v18 = vsel %vm992_vm6, %v3781_v0, %v995_v63  ;;  %v1038_v45 = vshrl.u32 %v1034_v1, 16  ;;  %vm1045_vm15 = vc.u32 %v1043_v44, %v1039_v14 }
 0x100   : > { %v1125_v22 = vsel %vm1124_vm14, %v1123_v5, 0  ;;  %v3873_v23 = vmul.f32 %v768_v7, %v766_v62  ;;  %v917_v43 = vsub.s32 4294967266, %v3866_v50  ;;  %v1046_v34 = vsel %vm1045_vm15, 1, %v4611_v27 }
 0x101   : > { %v1027_v19 = vadd.s32 %v1026_v13, %v1016_v38  ;;  %v4612_v40 = vxor.u32 2147483648, %v3813_v28  ;;  %v1040_v51 = vshrl.u32 %v1035_v10, 16  ;;  %v1048_v56 = vadd.s32 %v1046_v34, %v1044_v26 }
 0x102   : > { %v1127_v0 = vand.u32 31, %v1125_v22  ;;  %v624_v1 = vmul.f32 %v623_v25, %v3766_v59  ;;  %v997_v5 = vsel %vm991_vm8, %v994_v4, %v996_v18  ;;  %v3889_v38 = vadd.s32 %v1043_v44, %v1039_v14 }
 0x103   : > { %v3882_v2 = vsel %vm485_vm9, %v3738_v49, %v4612_v40  ;;  %v3887_v7 = vadd.s32 %v1027_v19, %v1018_v48  ;;  %v632_v62 = vadd.f32 -0.16666654, %v631_v24  ;;  %v897_v63 = vadd.s32 %v3693_v53, %v3691_v32 }
 0x104   : > { %v1049_v60 = vadd.s32 %v1048_v56, %v1038_v45  ;;  %v3893_v52 = vsub.s32 32, %v1127_v0  ;;  %v770_v10 = vxor.u32 2147483648, %v3873_v23  ;;  %v913_v57 = vsub.s32 32, %v3866_v50 }
 0x105   : > { %v918_v20 = vadd.s32 127, %v917_v43  ;;  %v4613_v25 = vand.u32 2147483647, %v3712_v47  ;;  %vm329_vm0 = vcmp.lt.s32.totalorder %v3720_v55, 2  ;;  %vm484_vm1 = vcmp.lt.s32.totalorder %v3730_v11, 2 }
 0x106   : > { %v1050_v4 = vadd.s32 %v1049_v60, %v1040_v51  ;;  %v1051_v24 = vmul.u32 %v3810_v37, %v997_v5  ;;  %v3902_v14 = vshrl.u32 %v1125_v22, 5  ;;  %v4614_v32 = vmov 683565275  }
 0x107   : > { %v1120_v6 = vand.u32 8388607, %v4613_v25  ;;  %v1130_v53 = vshll.u32 %v4614_v32, %v1127_v0  ;;  %vm1053_vm2 = vc.u32 %v3887_v7, %v3889_v38  ;;  %v1131_v45 = vshrl.u32 %v4604_v46, %v3893_v52 }
 0x108   : > { %v1133_v44 = vshll.u32 %v4604_v46, %v1127_v0  ;;  %v1134_v48 = vshrl.u32 %v4606_v61, %v3893_v52  ;;  %v1054_v13 = vadd.s32 1, %v1050_v4  ;;  %v1136_v26 = vshll.u32 %v4606_v61, %v1127_v0 }
 0x109   : > { %v1137_v37 = vshrl.u32 %v4605_v54, %v3893_v52  ;;  %v1139_v18 = vshll.u32 %v4605_v54, %v1127_v0  ;;  %v914_v22 = vshll.u32 %v3777_v39, %v3866_v50  ;;  %v915_v43 = vshrl.u32 %v897_v63, %v913_v57 }
 0x10a   : > { %v1121_v19 = vor.u32 8388608, %v1120_v6  ;;  %v1140_v34 = vshrl.u32 %v4607_v29, %v3893_v52  ;;  %v919_v40 = vshll.u32 %v918_v20, 23  ;;  %v1055_v51 = vsel %vm1053_vm2, %v1054_v13, %v1050_v4 }
 0x10b   : > { %v1142_v56 = vshll.u32 %v4607_v29, %v1127_v0  ;;  %v1143_v5 = vshrl.u32 %v4608_v31, %v3893_v52  ;;  %v1056_v60 = vadd.s32 %v1055_v51, %v1051_v24  ;;  %v3923_v25 = vor.u32 %v1131_v45, %v1130_v53 }
 0x10c   : > { %v3925_v49 = vor.u32 %v1134_v48, %v1133_v44  ;;  %vm1145_vm3 = vcmp.lt.s32.totalorder %v3902_v14, 1  ;;  %v3928_v39 = vor.u32 %v1137_v37, %v1136_v26  ;;  %v1141_v50 = vor.u32 %v1140_v34, %v1139_v18 }
 0x10d   : > { %v1144_v63 = vor.u32 %v1143_v5, %v1142_v56  ;;  %vm1148_vm4 = vcmp.lt.s32.totalorder %v3902_v14, 4  ;;  %v4615_v57 = vand.u32 2147483647, %v3396_v12  ;;  %vm650_vm6 = vcmp.lt.s32.totalorder %v3396_v12, 0 }
 0x10e   : > { %v1057_v20 = vadd.s32 536870912, %v1056_v60  ;;  %vm1147_vm7 = vcmp.lt.s32.totalorder %v3902_v14, 3  ;;  %v625_v6 = vadd.f32 -0.4999988, %v624_v1  ;;  %v633_v4 = vmul.f32 %v632_v62, %v3766_v59 }
 0x10f   : > { %vm3933_vm5 = vcmp.le.f32.partialorder %v4615_v57, 0.7853982  ;;  %v916_v24 = vor.u32 %v915_v43, %v914_v22  ;;  %v1154_v53 = vsel %vm1148_vm4, %v1141_v50, 920167782  ;;  %v920_v45 = vor.u32 4788187, %v919_v40 }
 0x110   : > { %v3942_v44 = vshrl.u32 %v1057_v20, 30  ;;  %vm1146_vm8 = vcmp.lt.s32.totalorder %v3902_v14, 2  ;;  %v1153_v48 = vsel %vm1145_vm3, %v3923_v25, %v3925_v49  ;;  %v771_v1 = vsel %vm650_vm6, %v770_v10, %v3873_v23 }
 0x111   : > { %v1155_v62 = vsel %vm1147_vm7, %v3928_v39, %v1154_v53  ;;  %v1158_v13 = vsel %vm1148_vm4, %v1144_v63, 1326507024  ;;  %v3957_v26 = vshll.u32 %v1121_v19, 8  ;;  %v3963_v37 = vsel %vm329_vm0, %v3840_v15, %v3832_v8 }
 0x112   : > { %v3969_v23 = vsel %vm484_vm1, %v3882_v2, %v3848_v36  ;;  %v1059_v10 = vshll.u32 %v3942_v44, 30  ;;  %v1157_v18 = vsel %vm1145_vm3, %v3925_v49, %v3928_v39  ;;  %v626_v22 = vmul.f32 %v625_v6, %v3766_v59 }
 0x113   : > { %4618 = vst [vmem:[#allocation17_spill] sm:$0xff] %v3969_v23  ;;  %v637_v43 = vadd.s32 3, %v3852_v42  ;;  %v1156_v55 = vsel %vm1146_vm8, %v1153_v48, %v1155_v62  ;;  %v1159_v8 = vsel %vm1147_vm7, %v1141_v50, %v1158_v13  ;;  %v3985_v11 = vsel %vm3933_vm5, %v3396_v12, %v771_v1 }
 0x114   : > { %v921_v15 = vand.u32 2147483647, %v920_v45  ;;  %v923_v36 = vcvt.s32.f32 %v916_v24  ;;  %v3987_v2 = vsub.s32 %v1056_v60, %v1059_v10  ;;  %v634_v19 = vadd.f32 1.0, %v633_v4 }
 0x115   : > { %v1160_v59 = vsel %vm1146_vm8, %v1157_v18, %v1159_v8  ;;  %v1162_v34 = vand.u32 65535, %v3957_v26  ;;  %v1187_v40 = vshrl.u32 %v1156_v55, 16  ;;  %v772_v51 = vsub.s32 4, %v3639_v41 }
 0x116   : > { %vm1061_vm9 = vcmp.lt.s32.totalorder %v3987_v2, 0  ;;  %v1062_v56 = vsub.s32 0, %v3987_v2  ;;  %v1163_v5 = vshrl.u32 %v3957_v26, 16  ;;  %v3996_v50 = vand.u32 3, %v637_v43 }
 0x117   : > { %v4000_v60 = vmul.f32 %v3985_v11, %v3985_v11  ;;  %v1164_v63 = vand.u32 65535, %v1160_v59  ;;  %v1165_v57 = vshrl.u32 %v1160_v59, 16  ;;  %v4002_v20 = vadd.f32 1.0, %v626_v22 }
 0x118   : > { %vm805_vm10 = vcmp.lt.s32.totalorder %v3448_v35, 0  ;;  %v924_v6 = vmul.f32 %v923_v36, %v921_v15  ;;  %v1063_v4 = vsel %vm1061_vm9, %v1062_v56, %v3987_v2  ;;  %v1186_v24 = vand.u32 65535, %v1156_v55 }
 0x119   : > { %4619 = vst [vmem:[#allocation18_spill] sm:$0xff] %v4002_v20  ;;  %v1064_v53 = vclz %v1063_v4  ;;  %v1166_v45 = vmul.u32 %v1164_v63, %v1162_v34  ;;  %v1167_v48 = vmul.u32 %v1165_v57, %v1162_v34  ;;  %v1189_v1 = vmul.u32 %v1187_v40, %v1162_v34 }
 0x11a   : > { %v4007_v62 = vmul.f32 %v634_v19, %v3744_v21  ;;  %v773_v13 = vsel %vm650_vm6, %v772_v51, %v3639_v41  ;;  %v777_v10 = vmul.f32 -0.001358992, %v4000_v60  ;;  %v1168_v18 = vmul.u32 %v1164_v63, %v1163_v5 }
 0x11b   : > { %v784_v22 = vmul.f32 -0.00019511016, %v4000_v60  ;;  %v2802_v43 = vadd.s32 4294967294, %v1064_v53  ;;  %v1169_v8 = vmul.u32 %v1165_v57, %v1163_v5  ;;  %v1170_v15 = vshll.u32 %v1167_v48, 16 }
 0x11c   : > { %4620 = vst [vmem:[#allocation19_spill] sm:$0xff] %v4007_v62  ;;  %v925_v55 = vxor.u32 2147483648, %v924_v6  ;;  %v1172_v36 = vshll.u32 %v1168_v18, 16  ;;  %v1188_v59 = vmul.u32 %v1186_v24, %v1162_v34  ;;  %v1190_v56 = vmul.u32 %v1186_v24, %v1163_v5 }
 0x11d   : > { %v4621_v4 = vand.u32 2147483647, %v3448_v35  ;;  %vm2803_vm12 = vcmp.lt.s32.totalorder %v2802_v43, 0  ;;  %vm1174_vm13 = vc.u32 %v1166_v45, %v1170_v15  ;;  %v1176_v41 = vadd.s32 %v1170_v15, %v1166_v45 }
 0x11e   : > { %v1192_v19 = vshll.u32 %v1189_v1, 16  ;;  %v1052_v51 = vadd.s32 %v3889_v38, %v3887_v7  ;;  %v1067_v63 = vsel %vm2803_vm12, 0, %v2802_v43  ;;  %v1175_v57 = vsel %vm1174_vm13, 1, %v4611_v27 }
 0x11f   : > { %vm4016_vm11 = vcmp.le.f32.partialorder %v4621_v4, 0.7853982  ;;  %v1271_v53 = vand.u32 2139095040, %v3717_v58  ;;  %v1072_v34 = vsub.s32 4294967266, %v1067_v63  ;;  %v1129_v24 = vshrl.u32 %v4614_v32, %v3893_v52 }
 0x120   : > { %v1177_v4 = vadd.s32 %v1175_v57, %v1169_v8  ;;  %v1191_v28 = vmul.u32 %v1187_v40, %v1163_v5  ;;  %v1150_v42 = vsel %vm1148_vm4, %v3928_v39, 2102212464  ;;  %v1171_v45 = vshrl.u32 %v1167_v48, 16 }
 0x121   : > { %vm1178_vm14 = vc.u32 %v1176_v41, %v1172_v36  ;;  %v1194_v15 = vshll.u32 %v1190_v56, 16  ;;  %vm643_vm15 = vcmp.eq.s32.totalorder %v3996_v50, 2  ;;  %v1068_v7 = vsub.s32 32, %v1067_v63 }
 0x122   : > { %v1073_v38 = vadd.s32 127, %v1072_v34  ;;  %v1179_v43 = vsel %vm1178_vm14, 1, %v4611_v27  ;;  %vm1196_vm0 = vc.u32 %v1188_v59, %v1192_v19  ;;  %v1198_v52 = vadd.s32 %v1192_v19, %v1188_v59 }
 0x123   : > { %v1181_v33 = vadd.s32 %v1179_v43, %v1177_v4  ;;  %v1197_v23 = vsel %vm1196_vm0, 1, %v4611_v27  ;;  %v1272_v8 = vshrl.u32 %v1271_v53, 23  ;;  %v926_v40 = vsel %vm805_vm10, %v925_v55, %v924_v6 }
 0x124   : > { %v1149_v39 = vsel %vm1145_vm3, %v1129_v24, %v3923_v25  ;;  %v1173_v5 = vshrl.u32 %v1168_v18, 16  ;;  %v1199_v48 = vadd.s32 %v1197_v23, %v1191_v28  ;;  %v1193_v41 = vshrl.u32 %v1189_v1, 16 }
 0x125   : > { %v1182_v36 = vadd.s32 %v1181_v33, %v1171_v45  ;;  %vm1200_vm1 = vc.u32 %v1198_v52, %v1194_v15  ;;  %v2807_v57 = vadd.s32 4294967169, %v1272_v8  ;;  %v1069_v34 = vshll.u32 %v3987_v2, %v1067_v63 }
 0x126   : > { %v1151_v59 = vsel %vm1147_vm7, %v3925_v49, %v1150_v42  ;;  %v1195_v19 = vshrl.u32 %v1190_v56, 16  ;;  %v1201_v53 = vsel %vm1200_vm1, 1, %v4611_v27  ;;  %v1070_v6 = vshrl.u32 %v1052_v51, %v1068_v7 }
 0x127   : > { %v1074_v55 = vshll.u32 %v1073_v38, 23  ;;  %v1203_v4 = vadd.s32 %v1201_v53, %v1199_v48  ;;  %v1278_v43 = vadd.s32 1, %v2807_v57  ;;  %v4574_v25 = vxor.u32 2147483648, %v4002_v20 }
 0x128   : > { %v778_v28 = vadd.f32 0.041655596, %v777_v10  ;;  %v4043_v33 = vadd.s32 %v1182_v36, %v1173_v5  ;;  %v4045_v23 = vadd.s32 %v1198_v52, %v1194_v15  ;;  %v4050_v2 = vsel %vm4016_vm11, %v3448_v35, %v926_v40 }
 0x129   : > { %v1152_v49 = vsel %vm1146_vm8, %v1149_v39, %v1151_v59  ;;  %v1204_v42 = vadd.s32 %v1203_v4, %v1193_v41  ;;  %vm1279_vm2 = vcmp.gt.s32.totalorder %v1278_v43, 0  ;;  %v4056_v1 = vsel %vm3933_vm5, 0, %v773_v13 }
 0x12a   : > { %4624 = vst [vmem:[#allocation20_spill] sm:$0xff] %v4056_v1  ;;  %v785_v18 = vadd.f32 0.008332121, %v784_v22  ;;  %v4576_v10 = vand.u32 2147483647, %v3717_v58  ;;  %v1280_v56 = vsel %vm1279_vm2, %v1278_v43, 0  ;;  %v1071_v51 = vor.u32 %v1070_v6, %v1069_v34 }
 0x12b   : > { %v1075_v63 = vor.u32 4788187, %v1074_v55  ;;  %v1205_v24 = vadd.s32 %v1204_v42, %v1195_v19  ;;  %v1282_v45 = vand.u32 31, %v1280_v56  ;;  %v4575_v15 = vxor.u32 2147483648, %v4007_v62 }
 0x12c   : > { %v4062_v14 = vmul.f32 %v4050_v2, %v4050_v2  ;;  %v1206_v7 = vmul.u32 %v3957_v26, %v1152_v49  ;;  %vm1208_vm3 = vc.u32 %v4043_v33, %v4045_v23  ;;  %v4072_v0 = vsel %vm643_vm15, %v4574_v25, %v4007_v62 }
 0x12d   : > { %v4075_v13 = vadd.s32 3, %v4056_v1  ;;  %v1209_v22 = vadd.s32 1, %v1205_v24  ;;  %v4077_v38 = vsub.s32 32, %v1282_v45  ;;  %v779_v52 = vmul.f32 %v778_v28, %v4000_v60 }
 0x12e   : > { %v786_v26 = vmul.f32 %v785_v18, %v4000_v60  ;;  %v927_v8 = vsub.s32 4, %v3749_v3  ;;  %v932_v40 = vmul.f32 -0.001358992, %v4062_v14  ;;  %v1076_v39 = vand.u32 2147483647, %v1075_v63 }
 0x12f   : > { %v1078_v5 = vcvt.s32.f32 %v1071_v51  ;;  %v1210_v48 = vsel %vm1208_vm3, %v1209_v22, %v1205_v24  ;;  %v1275_v36 = vand.u32 8388607, %v4576_v10  ;;  %vm960_vm4 = vcmp.lt.s32.totalorder %v3634_v9, 0 }
 0x130   : > { %v1211_v41 = vadd.s32 %v1210_v48, %v1206_v7  ;;  %v1288_v57 = vshll.u32 %v4604_v46, %v1282_v45  ;;  %v1291_v34 = vshll.u32 %v4606_v61, %v1282_v45  ;;  %v1294_v59 = vshll.u32 %v4605_v54, %v1282_v45 }
 0x131   : > { %v1289_v19 = vshrl.u32 %v4606_v61, %v4077_v38  ;;  %v1292_v53 = vshrl.u32 %v4605_v54, %v4077_v38  ;;  %v1295_v6 = vshrl.u32 %v4607_v29, %v4077_v38  ;;  %v1297_v55 = vshll.u32 %v4607_v29, %v1282_v45 }
 0x132   : > { %vm640_vm5 = vcmp.eq.s32.totalorder %v3996_v50, 0  ;;  %v780_v4 = vadd.f32 -0.4999988, %v779_v52  ;;  %v939_v43 = vmul.f32 -0.00019511016, %v4062_v14  ;;  %v1212_v28 = vadd.s32 536870912, %v1211_v41 }
 0x133   : > { %v4098_v49 = vshrl.u32 %v1280_v56, 5  ;;  %v787_v42 = vadd.f32 -0.16666654, %v786_v26  ;;  %v4625_v18 = vand.u32 2147483647, %v3634_v9  ;;  %v1079_v54 = vmul.f32 %v1078_v5, %v1076_v39 }
 0x134   : > { %v1276_v51 = vor.u32 8388608, %v1275_v36  ;;  %v1298_v29 = vshrl.u32 %v4608_v31, %v4077_v38  ;;  %v933_v63 = vadd.f32 0.041655596, %v932_v40  ;;  %v4108_v24 = vshrl.u32 %v1212_v28, 30 }
 0x135   : > { %vm4102_vm6 = vcmp.le.f32.partialorder %v4625_v18, 0.7853982  ;;  %v1285_v7 = vshll.u32 %v4614_v32, %v1282_v45  ;;  %v1286_v56 = vshrl.u32 %v4604_v46, %v4077_v38  ;;  %v4113_v22 = vor.u32 %v1289_v19, %v1288_v57 }
 0x136   : > { %v4115_v52 = vor.u32 %v1292_v53, %v1291_v34  ;;  %v1296_v26 = vor.u32 %v1295_v6, %v1294_v59  ;;  %v1299_v48 = vor.u32 %v1298_v29, %v1297_v55  ;;  %v940_v18 = vadd.f32 0.008332121, %v939_v43 }
 0x137   : > { %v1214_v39 = vshll.u32 %v4108_v24, 30  ;;  %vm1300_vm7 = vcmp.lt.s32.totalorder %v4098_v49, 1  ;;  %vm1303_vm8 = vcmp.lt.s32.totalorder %v4098_v49, 4  ;;  %v781_v31 = vmul.f32 %v780_v4, %v4000_v60 }
 0x138   : > { %v928_v45 = vsel %vm805_vm10, %v927_v8, %v3749_v3  ;;  %v1080_v46 = vxor.u32 2147483648, %v1079_v54  ;;  %v4124_v40 = vshll.u32 %v1276_v51, 8  ;;  %v788_v5 = vmul.f32 %v787_v42, %v4000_v60 }
 0x139   : > { %v1215_v36 = vsub.s32 %v1211_v41, %v1214_v39  ;;  %v4127_v57 = vor.u32 %v1286_v56, %v1285_v7  ;;  %vm1302_vm9 = vcmp.lt.s32.totalorder %v4098_v49, 3  ;;  %vm1301_vm12 = vcmp.lt.s32.totalorder %v4098_v49, 2 }
 0x13a   : > { %v1309_v34 = vsel %vm1303_vm8, %v1296_v26, 920167782  ;;  %v1312_v3 = vsel %vm1300_vm7, %v4113_v22, %v4115_v52  ;;  %v1313_v8 = vsel %vm1303_vm8, %v1299_v48, 1326507024  ;;  %v934_v60 = vmul.f32 %v933_v63, %v4062_v14 }
 0x13b   : > { %v941_v41 = vmul.f32 %v940_v18, %v4062_v14  ;;  %vm1216_vm10 = vcmp.lt.s32.totalorder %v1215_v36, 0  ;;  %v1217_v59 = vsub.s32 0, %v1215_v36  ;;  %v1081_v19 = vsel %vm960_vm4, %v1080_v46, %v1079_v54 }
 0x13c   : > { %v1314_v53 = vsel %vm1302_vm9, %v1296_v26, %v1313_v8  ;;  %v1317_v6 = vand.u32 65535, %v4124_v40  ;;  %v1318_v55 = vshrl.u32 %v4124_v40, 16  ;;  %v1308_v43 = vsel %vm1300_vm7, %v4127_v57, %v4113_v22 }
 0x13d   : > { %v1218_v4 = vsel %vm1216_vm10, %v1217_v59, %v1215_v36  ;;  %v1310_v28 = vsel %vm1302_vm9, %v4115_v52, %v1309_v34  ;;  %v1315_v42 = vsel %vm1301_vm12, %v1312_v3, %v1314_v53  ;;  %v4161_v54 = vsel %vm640_vm5, %v4002_v20, %v4575_v15 }
 0x13e   : > { %v1219_v51 = vclz %v1218_v4  ;;  %v1319_v29 = vand.u32 65535, %v1315_v42  ;;  %v1320_v63 = vshrl.u32 %v1315_v42, 16  ;;  %v4164_v7 = vand.u32 3, %v4075_v13 }
 0x13f   : > { %v4168_v56 = vsel %vm4016_vm11, 0, %v928_v45  ;;  %v942_v26 = vadd.f32 -0.16666654, %v941_v41  ;;  %v4173_v48 = vsel %vm4102_vm6, %v3634_v9, %v1081_v19  ;;  %v4175_v18 = vadd.f32 1.0, %v781_v31 }
 0x140   : > { %v2805_v39 = vadd.s32 4294967294, %v1219_v51  ;;  %v1311_v46 = vsel %vm1301_vm12, %v1308_v43, %v1310_v28  ;;  %v1322_v34 = vmul.u32 %v1320_v63, %v1317_v6  ;;  %v4179_v3 = vadd.f32 1.0, %v788_v5 }
 0x141   : > { %v4181_v13 = vadd.f32 -0.4999988, %v934_v60  ;;  %v1207_v21 = vadd.s32 %v4045_v23, %v4043_v33  ;;  %v4185_v45 = vmul.u32 %v1319_v29, %v1318_v55  ;;  %v4189_v8 = vmul.f32 %v4173_v48, %v4173_v48 }
 0x142   : > { %vm2806_vm11 = vcmp.lt.s32.totalorder %v2805_v39, 0  ;;  %v1321_v31 = vmul.u32 %v1319_v29, %v1317_v6  ;;  %v1325_v41 = vshll.u32 %v1322_v34, 16  ;;  %v4192_v59 = vmul.f32 %v942_v26, %v4062_v14 }
 0x143   : > { %v1222_v19 = vsel %vm2806_vm11, 0, %v2805_v39  ;;  %v1341_v5 = vand.u32 65535, %v1311_v46  ;;  %v1342_v53 = vshrl.u32 %v1311_v46, 16  ;;  %v1324_v28 = vmul.u32 %v1320_v63, %v1318_v55 }
 0x144   : > { %v1223_v60 = vsub.s32 32, %v1222_v19  ;;  %v1224_v4 = vshll.u32 %v1215_v36, %v1222_v19  ;;  %v1227_v43 = vsub.s32 4294967266, %v1222_v19  ;;  %v1082_v33 = vsub.s32 4, %v3942_v44 }
 0x145   : > { %v1087_v23 = vmul.f32 -0.001358992, %v4189_v8  ;;  %v1284_v42 = vshrl.u32 %v4614_v32, %v4077_v38  ;;  %v1327_v51 = vshll.u32 %v4185_v45, 16  ;;  %v1094_v29 = vmul.f32 -0.00019511016, %v4189_v8 }
 0x146   : > { %v1225_v26 = vshrl.u32 %v1207_v21, %v1223_v60  ;;  %v1228_v25 = vadd.s32 127, %v1227_v43  ;;  %vm1329_vm13 = vc.u32 %v1321_v31, %v1325_v41  ;;  %vm1115_vm14 = vcmp.lt.s32.totalorder %v3712_v47, 0 }
 0x147   : > { %v1330_v36 = vsel %vm1329_vm13, 1, %v4611_v27  ;;  %v1331_v39 = vadd.s32 %v1325_v41, %v1321_v31  ;;  %v1343_v63 = vmul.u32 %v1341_v5, %v1317_v6  ;;  %v1344_v46 = vmul.u32 %v1342_v53, %v1317_v6 }
 0x148   : > { %v1226_v19 = vor.u32 %v1225_v26, %v1224_v4  ;;  %v1229_v15 = vshll.u32 %v1228_v25, 23  ;;  %v1332_v10 = vadd.s32 %v1330_v36, %v1324_v28  ;;  %v1345_v20 = vmul.u32 %v1341_v5, %v1318_v55 }
 0x149   : > { %v1326_v62 = vshrl.u32 %v1322_v34, 16  ;;  %vm1333_vm15 = vc.u32 %v1331_v39, %v1327_v51  ;;  %v1346_v32 = vmul.u32 %v1342_v53, %v1318_v55  ;;  %v1347_v38 = vshll.u32 %v1344_v46, 16 }
 0x14a   : > { %v1230_v1 = vor.u32 4788187, %v1229_v15  ;;  %v1233_v58 = vcvt.s32.f32 %v1226_v19  ;;  %v1334_v21 = vsel %vm1333_vm15, 1, %v4611_v27  ;;  %v1349_v60 = vshll.u32 %v1345_v20, 16 }
 0x14b   : > { %v1305_v43 = vsel %vm1303_vm8, %v4115_v52, 2102212464  ;;  %v1336_v31 = vadd.s32 %v1334_v21, %v1332_v10  ;;  %vm1351_vm0 = vc.u32 %v1343_v63, %v1347_v38  ;;  %v1353_v6 = vadd.s32 %v1347_v38, %v1343_v63 }
 0x14c   : > { %v1095_v41 = vadd.f32 0.008332121, %v1094_v29  ;;  %v1231_v25 = vand.u32 2147483647, %v1230_v1  ;;  %v1328_v5 = vshrl.u32 %v4185_v45, 16  ;;  %v1352_v34 = vsel %vm1351_vm0, 1, %v4611_v27 }
 0x14d   : > { %v1337_v55 = vadd.s32 %v1336_v31, %v1326_v62  ;;  %v1348_v53 = vshrl.u32 %v1344_v46, 16  ;;  %v1354_v15 = vadd.s32 %v1352_v34, %v1346_v32  ;;  %vm1355_vm1 = vc.u32 %v1353_v6, %v1349_v60 }
 0x14e   : > { %vm795_vm2 = vcmp.eq.s32.totalorder %v4164_v7, 0  ;;  %vm798_vm3 = vcmp.eq.s32.totalorder %v4164_v7, 2  ;;  %v1234_v4 = vmul.f32 %v1233_v58, %v1231_v25  ;;  %v1304_v10 = vsel %vm1300_vm7, %v1284_v42, %v4127_v57 }
 0x14f   : > { %v1306_v1 = vsel %vm1302_vm9, %v4113_v22, %v1305_v43  ;;  %v1356_v52 = vsel %vm1355_vm1, 1, %v4611_v27  ;;  %v1088_v45 = vadd.f32 0.041655596, %v1087_v23  ;;  %v4628_v62 = vand.u32 2147483647, %v3712_v47 }
 0x150   : > { %v1350_v51 = vshrl.u32 %v1345_v20, 16  ;;  %v1358_v29 = vadd.s32 %v1356_v52, %v1354_v15  ;;  %v1096_v58 = vmul.f32 %v1095_v41, %v4189_v8  ;;  %v1235_v26 = vxor.u32 2147483648, %v1234_v4 }
 0x151   : > { %vm4219_vm5 = vcmp.le.f32.partialorder %v4628_v62, 0.7853982  ;;  %v4224_v36 = vadd.s32 %v1337_v55, %v1328_v5  ;;  %v4226_v57 = vadd.s32 %v1353_v6, %v1349_v60  ;;  %v4230_v22 = vmul.f32 %v4179_v3, %v3985_v11 }
 0x152   : > { %v947_v27 = vadd.s32 3, %v4168_v56  ;;  %v1307_v23 = vsel %vm1301_vm12, %v1304_v10, %v1306_v1  ;;  %v1359_v42 = vadd.s32 %v1358_v29, %v1348_v53  ;;  %vm639_vm7 = vcmp.lt.s32.totalorder %v3996_v50, 2 }
 0x153   : > { %vm794_vm8 = vcmp.lt.s32.totalorder %v4164_v7, 2  ;;  %v936_v20 = vmul.f32 %v4181_v13, %v4062_v14  ;;  %v944_v39 = vadd.f32 1.0, %v4192_v59  ;;  %v1083_v11 = vsel %vm960_vm4, %v1082_v33, %v3942_v44 }
 0x154   : > { %v1236_v3 = vsel %vm1115_vm14, %v1235_v26, %v1234_v4  ;;  %v1089_v49 = vmul.f32 %v1088_v45, %v4189_v8  ;;  %v1237_v63 = vsub.s32 4, %v4108_v24  ;;  %v1360_v19 = vadd.s32 %v1359_v42, %v1350_v51 }
 0x155   : > { %v1239_v46 = vsel %vm4219_vm5, %v3712_v47, %v1236_v3  ;;  %v1097_v32 = vadd.f32 -0.16666654, %v1096_v58  ;;  %v1361_v13 = vmul.u32 %v4124_v40, %v1307_v23  ;;  %vm1363_vm9 = vc.u32 %v4224_v36, %v4226_v57 }
 0x156   : > { %v1241_v14 = vmul.f32 %v1239_v46, %v1239_v46  ;;  %v796_v44 = vxor.u32 2147483648, %v4230_v22  ;;  %v799_v59 = vxor.u32 2147483648, %v4175_v18  ;;  %v948_v33 = vand.u32 3, %v947_v27 }
 0x157   : > { %v1364_v38 = vadd.s32 1, %v1360_v19  ;;  %vm326_vm4 = vweird.f32 %v3137_v16  ;;  %vm481_vm12 = vweird.f32 %v3140_v17  ;;  %v4257_v21 = vadd.f32 1.0, %v936_v20 }
 0x158   : > { %v4260_v60 = vmul.f32 %v944_v39, %v4050_v2  ;;  %v1242_v43 = vmul.f32 -0.001358992, %v1241_v14  ;;  %v1249_v40 = vmul.f32 -0.00019511016, %v1241_v14  ;;  %v4264_v31 = vsel %vm4102_vm6, 0, %v1083_v11 }
 0x159   : > { %v1090_v6 = vadd.f32 -0.4999988, %v1089_v49  ;;  %v1238_v41 = vsel %vm1115_vm14, %v1237_v63, %v4108_v24  ;;  %v1365_v25 = vsel %vm1363_vm9, %v1364_v38, %v1360_v19  ;;  %v1098_v5 = vmul.f32 %v1097_v32, %v4189_v8  ;;  %v4631_v63 = vld [vmem:[#allocation17_spill] sm:$0xff] }
 0x15a   : > { %v1243_v34 = vadd.f32 0.041655596, %v1242_v43  ;;  %v1250_v55 = vadd.f32 0.008332121, %v1249_v40  ;;  %v1366_v53 = vadd.s32 %v1365_v25, %v1361_v13  ;;  %v797_v2 = vsel %vm795_vm2, %v4175_v18, %v796_v44 }
 0x15b   : > { %v800_v61 = vsel %vm798_vm3, %v799_v59, %v4230_v22  ;;  %vm950_vm6 = vcmp.eq.s32.totalorder %v948_v33, 0  ;;  %vm953_vm10 = vcmp.eq.s32.totalorder %v948_v33, 2  ;;  %v954_v24 = vxor.u32 2147483648, %v4257_v21 }
 0x15c   : > { %v1244_v15 = vmul.f32 %v1243_v34, %v1241_v14  ;;  %v1251_v4 = vmul.f32 %v1250_v55, %v1241_v14  ;;  %v1367_v10 = vadd.s32 536870912, %v1366_v53  ;;  %v951_v1 = vxor.u32 2147483648, %v4260_v60 }
 0x15d   : > { %v1091_v52 = vmul.f32 %v1090_v6, %v4189_v8  ;;  %v1102_v45 = vadd.s32 3, %v4264_v31  ;;  %v4286_v62 = vsel %vm4219_vm5, 0, %v1238_v41  ;;  %v1099_v51 = vadd.f32 1.0, %v1098_v5 }
 0x15e   : > { %v1245_v29 = vadd.f32 -0.4999988, %v1244_v15  ;;  %v1252_v58 = vadd.f32 -0.16666654, %v1251_v4  ;;  %v1368_v26 = vshrl.u32 %v1367_v10, 30  ;;  %vm636_vm11 = vweird.f32 %v3149_v30 }
 0x15f   : > { %v646_v27 = vsel %vm639_vm7, %v4161_v54, %v4072_v0  ;;  %vm791_vm13 = vweird.f32 %v3396_v12  ;;  %v801_v8 = vsel %vm794_vm8, %v797_v2, %v800_v61  ;;  %v1257_v42 = vadd.s32 3, %v4286_v62 }
 0x160   : > { %v1246_v23 = vmul.f32 %v1245_v29, %v1241_v14  ;;  %v1253_v28 = vmul.f32 %v1252_v58, %v1241_v14  ;;  %v1369_v20 = vshll.u32 %v1368_v26, 30  ;;  %vm949_vm14 = vcmp.lt.s32.totalorder %v948_v33, 2  ;;  %v4632_v33 = vld [vmem:[#allocation13_spill] sm:$0xff] }
 0x161   : > { %v952_v39 = vsel %vm950_vm6, %v4257_v21, %v951_v1  ;;  %v955_v50 = vsel %vm953_vm10, %v954_v24, %v4260_v60  ;;  %v1103_v0 = vand.u32 3, %v1102_v45  ;;  %v4305_v54 = vadd.f32 1.0, %v1091_v52  ;;  %v4636_v29 = vld [vmem:[#allocation9_spill] sm:$0xff] }
 0x162   : > { %v4308_v7 = vmul.f32 %v1099_v51, %v4173_v48  ;;  %v1254_v11 = vadd.f32 1.0, %v1253_v28  ;;  %v1370_v3 = vsub.s32 %v1366_v53, %v1369_v20  ;;  %v4313_v49 = vsel %vm326_vm4, nan, %v3963_v37 }
 0x163   : > { %v4318_v19 = vsel %vm481_vm12, nan, %v4631_v63  ;;  %v4320_v32 = vadd.f32 1.0, %v1246_v23  ;;  %v1258_v13 = vand.u32 3, %v1257_v42  ;;  %v4326_v38 = vsel %vm636_vm11, nan, %v646_v27  ;;  %v4637_v27 = vld [vmem:[#allocation10_spill] sm:$0xff] }
 0x164   : > { %v4322_v14 = vmul.f32 %v1254_v11, %v1239_v46  ;;  %vm1371_vm15 = vcmp.lt.s32.totalorder %v1370_v3, 0  ;;  %v1372_v48 = vsub.s32 0, %v1370_v3  ;;  %v4330_v37 = vsel %vm791_vm13, nan, %v801_v8  ;;  %v4638_v11 = vld [vmem:[#allocation16_spill] sm:$0xff] }
 0x165   : > { %vm946_vm0 = vweird.f32 %v3448_v35  ;;  %v956_v43 = vsel %vm949_vm14, %v952_v39, %v955_v50  ;;  %vm1105_vm1 = vcmp.eq.s32.totalorder %v1103_v0, 0  ;;  %v1106_v40 = vxor.u32 2147483648, %v4308_v7 }
 0x166   : > { %v1109_v46 = vxor.u32 2147483648, %v4305_v54  ;;  %v1373_v6 = vsel %vm1371_vm15, %v1372_v48, %v1370_v3  ;;  %vm1108_vm2 = vcmp.eq.s32.totalorder %v1103_v0, 2  ;;  %v1261_v41 = vxor.u32 2147483648, %v4322_v14 }
 0x167   : > { %v1264_v25 = vxor.u32 2147483648, %v4320_v32  ;;  %v1374_v5 = vclz %v1373_v6  ;;  %v4340_v34 = vsel %vm946_vm0, nan, %v956_v43  ;;  %vm4585_vm3 = vweird.f32 %v3634_v9  ;;  %v4641_v43 = vld [vmem:[#allocation11_spill] sm:$0xff] }
 0x168   : > { %vm1260_vm5 = vcmp.eq.s32.totalorder %v1258_v13, 0  ;;  %vm1263_vm7 = vcmp.eq.s32.totalorder %v1258_v13, 2  ;;  %vm1104_vm8 = vcmp.lt.s32.totalorder %v1103_v0, 2  ;;  %v4633_v55 = vand.u32 2147483647, %v4632_v33 }
 0x169   : > { %vm1270_vm6 = vcmp.lt.s32.totalorder %v4632_v33, 0  ;;  %v2808_v2 = vadd.s32 4294967294, %v1374_v5  ;;  %v1107_v61 = vsel %vm1105_vm1, %v4305_v54, %v1106_v40  ;;  %v1110_v15 = vsel %vm1108_vm2, %v1109_v46, %v4308_v7 }
 0x16a   : > { %vm4345_vm9 = vcmp.le.f32.partialorder %v4633_v55, 0.7853982  ;;  %vm1259_vm10 = vcmp.lt.s32.totalorder %v1258_v13, 2  ;;  %v1392_v4 = vsub.s32 4, %v1368_v26  ;;  %v1262_v10 = vsel %vm1260_vm5, %v4320_v32, %v1261_v41  ;;  %v4639_v13 = vld [vmem:[#allocation12_spill] sm:$0xff] }
 0x16b   : > { %v1265_v52 = vsel %vm1263_vm7, %v1264_v25, %v4322_v14  ;;  %v1362_v45 = vadd.s32 %v4226_v57, %v4224_v36  ;;  %vm2809_vm14 = vcmp.lt.s32.totalorder %v2808_v2, 0  ;;  %vm4584_vm15 = vweird.f32 %v3712_v47 }
 0x16c   : > { %v1377_v51 = vsel %vm2809_vm14, 0, %v2808_v2  ;;  %v1567_v58 = vand.u32 3, %v4636_v29  ;;  %v1721_v8 = vand.u32 3, %v4637_v27  ;;  %v1111_v23 = vsel %vm1104_vm8, %v1107_v61, %v1110_v15  ;;  %v4647_v29 = vld [vmem:[#allocation15_spill] sm:$0xff]  ;;  %v4649_v27 = vld [vmem:[#allocation14_spill] sm:$0xff] }
 0x16d   : > { %v1378_v28 = vsub.s32 32, %v1377_v51  ;;  %v1379_v42 = vshll.u32 %v1370_v3, %v1377_v51  ;;  %v1382_v20 = vsub.s32 4294967266, %v1377_v51  ;;  %v1266_v39 = vsel %vm1259_vm10, %v1262_v10, %v1265_v52 }
 0x16e   : > { %v1393_v50 = vsel %vm1270_vm6, %v1392_v4, %v1368_v26  ;;  %vm1569_vm1 = vcmp.eq.s32.totalorder %v1567_v58, 0  ;;  %v1875_v36 = vand.u32 3, %v4638_v11  ;;  %vm1568_vm2 = vcmp.lt.s32.totalorder %v1567_v58, 2  ;;  %v4643_v4 = vld [vmem:[#allocation8_spill] sm:$0xff] }
 0x16f   : > { %v1380_v57 = vshrl.u32 %v1362_v45, %v1378_v28  ;;  %v1383_v63 = vadd.s32 127, %v1382_v20  ;;  %v4640_v48 = vxor.u32 2147483648, %v4639_v13  ;;  %v4377_v0 = vsel %vm4585_vm3, nan, %v1111_v23 }
 0x170   : > { %vm1572_vm5 = vcmp.eq.s32.totalorder %v1567_v58, 2  ;;  %vm1723_vm7 = vcmp.eq.s32.totalorder %v1721_v8, 0  ;;  %vm1726_vm8 = vcmp.eq.s32.totalorder %v1721_v8, 2  ;;  %v4381_v26 = vsel %vm4345_vm9, 0, %v1393_v50 }
 0x171   : > { %v1571_v6 = vsel %vm1569_vm1, %v4641_v43, %v4640_v48  ;;  %v1381_v3 = vor.u32 %v1380_v57, %v1379_v42  ;;  %v1384_v5 = vshll.u32 %v1383_v63, 23  ;;  %v4642_v55 = vxor.u32 2147483648, %v4641_v43  ;;  %v4652_v57 = vld [vmem:[#allocation19_spill] sm:$0xff] }
 0x172   : > { %v4388_v61 = vsel %vm4584_vm15, nan, %v1266_v39  ;;  %vm1722_vm10 = vcmp.lt.s32.totalorder %v1721_v8, 2  ;;  %vm1877_vm14 = vcmp.eq.s32.totalorder %v1875_v36, 0  ;;  %v4644_v10 = vand.u32 1, %v4643_v4  ;;  %v4651_v39 = vld [vmem:[#allocation20_spill] sm:$0xff] }
 0x173   : > { %v1574_v2 = vsel %vm1572_vm5, %v4642_v55, %v4639_v13  ;;  %v1385_v45 = vor.u32 4788187, %v1384_v5  ;;  %v1388_v51 = vcvt.s32.f32 %v1381_v3  ;;  %v4648_v58 = vxor.u32 2147483648, %v4647_v29  ;;  %v4654_v13 = vld [vmem:[#allocation18_spill] sm:$0xff] }
 0x174   : > { %v1575_v15 = vsel %vm1568_vm2, %v1571_v6, %v1574_v2  ;;  %vm4392_vm1 = vcmp.eq.s32.totalorder %v4644_v10, 0  ;;  %v4650_v28 = vxor.u32 2147483648, %v4649_v27  ;;  %vm1876_vm2 = vcmp.lt.s32.totalorder %v1875_v36, 2 }
 0x175   : > { %v1725_v23 = vsel %vm1723_vm7, %v4649_v27, %v4648_v58  ;;  %v4404_v20 = vsel %vm326_vm4, nan, %v1575_v15  ;;  %vm1880_vm5 = vcmp.eq.s32.totalorder %v1875_v36, 2  ;;  %v2029_v50 = vand.u32 3, %v4651_v39  ;;  %v2666_v58 = vld [vmem:[%s3110_s24 + $0x18] sm:$0xff] }
 0x176   : > { %v1728_v42 = vsel %vm1726_vm8, %v4650_v28, %v4647_v29  ;;  %v1386_v11 = vand.u32 2147483647, %v1385_v45  ;;  %v4653_v63 = vxor.u32 2147483648, %v4652_v57  ;;  %v4655_v43 = vxor.u32 2147483648, %v4654_v13  ;;  %v2664_v29 = vld [vmem:[%s3110_s24 + $0x8] sm:$0xff] }
 0x177   : > { %v2183_v3 = vand.u32 3, %v4168_v56  ;;  %vm2030_vm7 = vcmp.lt.s32.totalorder %v2029_v50, 2  ;;  %vm2031_vm8 = vcmp.eq.s32.totalorder %v2029_v50, 0  ;;  %vm2034_vm15 = vcmp.eq.s32.totalorder %v2029_v50, 2  ;;  %v2669_v50 = vld [vmem:[%s3110_s24 + $0x30] sm:$0xff] }
 0x178   : > { %v1879_v48 = vsel %vm1877_vm14, %v4654_v13, %v4653_v63  ;;  %v1882_v6 = vsel %vm1880_vm5, %v4655_v43, %v4652_v57  ;;  %v2337_v16 = vand.u32 3, %v4264_v31  ;;  %v1389_v5 = vmul.f32 %v1388_v51, %v1386_v11 }
 0x179   : > { %v1729_v36 = vsel %vm1722_vm10, %v1725_v23, %v1728_v42  ;;  %v2033_v55 = vsel %vm2031_vm8, %v4175_v18, %v796_v44  ;;  %v2036_v2 = vsel %vm2034_vm15, %v799_v59, %v4230_v22  ;;  %v1883_v15 = vsel %vm1876_vm2, %v1879_v48, %v1882_v6  ;;  %v2667_v23 = vld [vmem:[%s3110_s24 + $0x20] sm:$0xff] }
 0x17a   : > { %vm2184_vm4 = vcmp.lt.s32.totalorder %v2183_v3, 2  ;;  %vm2185_vm14 = vcmp.eq.s32.totalorder %v2183_v3, 0  ;;  %vm2188_vm5 = vcmp.eq.s32.totalorder %v2183_v3, 2  ;;  %v1390_v56 = vxor.u32 2147483648, %v1389_v5 }
 0x17b   : > { %v2037_v4 = vsel %vm2030_vm7, %v2033_v55, %v2036_v2  ;;  %v2187_v31 = vsel %vm2185_vm14, %v4257_v21, %v951_v1  ;;  %v2190_v8 = vsel %vm2188_vm5, %v954_v24, %v4260_v60  ;;  %vm2338_vm10 = vcmp.lt.s32.totalorder %v2337_v16, 2 }
 0x17c   : > { %v2191_v10 = vsel %vm2184_vm4, %v2187_v31, %v2190_v8  ;;  %vm2339_vm8 = vcmp.eq.s32.totalorder %v2337_v16, 0  ;;  %vm2342_vm3 = vcmp.eq.s32.totalorder %v2337_v16, 2  ;;  %v1391_v18 = vsel %vm1270_vm6, %v1390_v56, %v1389_v5 }
 0x17d   : > { %v1730_v22 = vsel %vm481_vm12, nan, %v1729_v36  ;;  %v2341_v44 = vsel %vm2339_vm8, %v4305_v54, %v1106_v40  ;;  %v2344_v59 = vsel %vm2342_vm3, %v1109_v46, %v4308_v7  ;;  %v1394_v21 = vsel %vm4345_vm9, %v4632_v33, %v1391_v18  ;;  %v2663_v40 = vld [vmem:[%s3110_s24] sm:$0xff] }
 0x17e   : > { %v1884_v60 = vsel %vm636_vm11, nan, %v1883_v15  ;;  %v2345_v24 = vsel %vm2338_vm10, %v2341_v44, %v2344_v59  ;;  %v2491_v17 = vand.u32 3, %v4286_v62  ;;  %v1396_v1 = vmul.f32 %v1394_v21, %v1394_v21 }
 0x17f   : > { %v2038_v45 = vsel %vm791_vm13, nan, %v2037_v4  ;;  %v2192_v54 = vsel %vm946_vm0, nan, %v2191_v10  ;;  %vm4656_vm12 = vweird.f32 %v3634_v9  ;;  %v2655_v30 = vsel %vm4392_vm1, %v4313_v49, %v4404_v20  ;;  %v2670_v10 = vld [vmem:[%s3110_s24 + $0x38] sm:$0xff] }
 0x180   : > { %v2346_v7 = vsel %vm4656_vm12, nan, %v2345_v24  ;;  %vm2492_vm3 = vcmp.lt.s32.totalorder %v2491_v17, 2  ;;  %vm2493_vm9 = vcmp.eq.s32.totalorder %v2491_v17, 0  ;;  %vm2496_vm6 = vcmp.eq.s32.totalorder %v2491_v17, 2 }
 0x181   : > { %v1397_v62 = vmul.f32 -0.001358992, %v1396_v1  ;;  %v1404_v12 = vmul.f32 -0.00019511016, %v1396_v1  ;;  %v2495_v35 = vsel %vm2493_vm9, %v4320_v32, %v1261_v41  ;;  %v2498_v9 = vsel %vm2496_vm6, %v1264_v25, %v4322_v14  ;;  %v2665_v41 = vld [vmem:[%s3110_s24 + $0x10] sm:$0xff] }
 0x182   : > { %v1412_v46 = vadd.s32 3, %v4381_v26  ;;  %v2499_v53 = vsel %vm2492_vm3, %v2495_v35, %v2498_v9  ;;  %v2656_v49 = vsel %vm4392_vm1, %v4318_v19, %v1730_v22  ;;  %v2657_v51 = vsel %vm4392_vm1, %v4326_v38, %v1884_v60 }
 0x183   : > { %v1398_v27 = vadd.f32 0.041655596, %v1397_v62  ;;  %v1405_v32 = vadd.f32 0.008332121, %v1404_v12  ;;  %vm4657_vm11 = vweird.f32 %v3712_v47  ;;  %v2658_v25 = vsel %vm4392_vm1, %v4330_v37, %v2038_v45  ;;  %v2668_v47 = vld [vmem:[%s3110_s24 + $0x28] sm:$0xff] }
 0x184   : > { %v2500_v14 = vsel %vm4657_vm11, nan, %v2499_v53  ;;  %v2659_v19 = vsel %vm4392_vm1, %v4340_v34, %v2192_v54  ;;  %v2660_v38 = vsel %vm4392_vm1, %v4377_v0, %v2346_v7  ;;  %v2671_v42 = vadd.f32 %v2663_v40, %v2655_v30 }
 0x185   : > { %v2661_v28 = vsel %vm4392_vm1, %v4388_v61, %v2500_v14  ;;  %v1399_v20 = vmul.f32 %v1398_v27, %v1396_v1  ;;  %v1406_v39 = vmul.f32 %v1405_v32, %v1396_v1  ;;  %v2672_v11 = vadd.f32 %v2664_v29, %v2656_v49 }
 0x186   : > { %v2673_v37 = vadd.f32 %v2665_v41, %v2657_v51  ;;  %v2674_v57 = vadd.f32 %v2666_v58, %v2658_v25  ;;  %v2675_v63 = vadd.f32 %v2667_v23, %v2659_v19  ;;  %2679 = vst [vmem:[%s4490_s17] sm:$0xff] %v2671_v42  ;;  %v2676_v61 = vadd.f32 %v2668_v47, %v2660_v38 }
 0x187   : > { %v1400_v34 = vadd.f32 -0.4999988, %v1399_v20  ;;  %v1407_v0 = vadd.f32 -0.16666654, %v1406_v39  ;;  %2680 = vst [vmem:[%s4490_s17 + $0x8] sm:$0xff] %v2672_v11  ;;  %v1413_v13 = vand.u32 3, %v1412_v46  ;;  %v2677_v43 = vadd.f32 %v2669_v50, %v2661_v28 }
 0x188   : > { %v2645_v48 = vand.u32 3, %v4381_v26  ;;  %2681 = vst [vmem:[%s4490_s17 + $0x10] sm:$0xff] %v2673_v37  ;;  %vm1411_vm14 = vweird.f32 %v4632_v33 }
 0x189   : > { %v1401_v6 = vmul.f32 %v1400_v34, %v1396_v1  ;;  %v1408_v3 = vmul.f32 %v1407_v0, %v1396_v1  ;;  %2682 = vst [vmem:[%s4490_s17 + $0x18] sm:$0xff] %v2674_v57  ;;  %vm1418_vm13 = vcmp.eq.s32.totalorder %v1413_v13, 2  ;;  %vm1414_vm15 = vcmp.lt.s32.totalorder %v1413_v13, 2 }
 0x18a   : > { %2683 = vst [vmem:[%s4490_s17 + $0x20] sm:$0xff] %v2675_v63  ;;  %vm2650_vm0 = vcmp.eq.s32.totalorder %v2645_v48, 2  ;;  %vm1415_vm2 = vcmp.eq.s32.totalorder %v1413_v13, 0  ;;  %vm2647_vm7 = vcmp.eq.s32.totalorder %v2645_v48, 0  ;;  %vm2646_vm4 = vcmp.lt.s32.totalorder %v2645_v48, 2 }
 0x18b   : > { %v1402_v16 = vadd.f32 1.0, %v1401_v6  ;;  %v1409_v5 = vadd.f32 1.0, %v1408_v3  ;;  %2684 = vst [vmem:[%s4490_s17 + $0x28] sm:$0xff] %v2676_v61 }
 0x18c   : > { %2685 = vst [vmem:[%s4490_s17 + $0x30] sm:$0xff] %v2677_v43 }
 0x18d   : > { %v1410_v36 = vmul.f32 %v1409_v5, %v1394_v21  ;;  %v1419_v55 = vxor.u32 2147483648, %v1402_v16 }
 0x18f   : > { %v1416_v26 = vxor.u32 2147483648, %v1410_v36  ;;  %v1420_v2 = vsel %vm1418_vm13, %v1419_v55, %v1410_v36  ;;  %v2652_v15 = vsel %vm2650_vm0, %v1419_v55, %v1410_v36 }
 0x191   : > { %v1417_v56 = vsel %vm1415_vm2, %v1402_v16, %v1416_v26  ;;  %v2649_v4 = vsel %vm2647_vm7, %v1402_v16, %v1416_v26 }
 0x192   : > { %v1421_v31 = vsel %vm1414_vm15, %v1417_v56, %v1420_v2  ;;  %v2653_v8 = vsel %vm2646_vm4, %v2649_v4, %v2652_v15 }
 0x193   : > { %v1422_v18 = vsel %vm1411_vm14, nan, %v1421_v31  ;;  %v2654_v22 = vsel %vm1411_vm14, nan, %v2653_v8 }
 0x194   : > { %v2662_v44 = vsel %vm4392_vm1, %v1422_v18, %v2654_v22 }
 0x195   : > { %v2678_v59 = vadd.f32 %v2670_v10, %v2662_v44 }
 0x197   : > { %2686 = vst [vmem:[%s4490_s17 + $0x38] sm:$0xff] %v2678_v59 }
 0x198   : > { %2957 = shalt.err (!%p2954_p4)
}
 0x199   : > { %s3007_s16 = smov 128   ;;  %s3008_s20 = smov 8  }
 0x19a   : > { %2843 = dma.vmem_to_hbm [thread:$0]  (%p3068_p10), %s2701_s29, 1024, %s2703_s30, %s2688_s10, %s3007_s16, %s3007_s16, %s3008_s20  }
 0x19b PF: > { %p2854_p5 = scmp.ge.s32.totalorder %s2996_s9, 2  ;;  %s2717_s21 = sand.u32 1, %s2984_s6  }
 0x19c   : > { %s2718_s22 = scalar_lea.sflag [#allocation4], %s2717_s21 }
 0x19d   : > { %p2850_p7 = pnand %p2854_p5, %p3072_p11 }
 0x19f   : > { %p2851_p8 = pneg %p2850_p7 }
 0x1a1   : > { %2979 = dma.done.wait (%p2851_p8), %s2718_s22, 1024  }
 0x1a2   : > { %2981 = vsyncadd (%p2851_p8), %s2718_s22, 4294966272  ;;  %p14_p9 = scmp.ge.s32.totalorder %s3044_s12, 6   ;;  %s4658_s6 = smov %s2988_s7 }
 0x1a3   : > { %s4659_s7 = smov %s2992_s8  ;;  %s4660_s8 = smov %s3056_s15 }
 0x1a4   : > { %s4661_s9 = smov %s3044_s12  ;;  %16 = sbr.rel (!%p14_p9) target bundleno = 5 (0x5), region = 69 }
 0x1a9   :  { %2724 = vsyncpa [#allocation3], 1 }
 0x1aa   :  { %2726 = vsyncpa [#allocation3 + $0x1], 1 }
 0x1ab   :  { %2727 = vsyncpa [#allocation4], 1 }
 0x1ac   :  { %2729 = vsyncpa [#allocation4 + $0x1], 1 }

</bundles_post_ra>
